<compile_context>
chip_gen: v6e
topology: v6e:2x2x1
jax: 0.10.0
libtpu: 0.0.40
codegen_flags: <defaults>
</compile_context>

<pallas_src>
import jax
import jax.numpy as jnp
from jax.experimental import pallas as pl
from jax.experimental.pallas import tpu as pltpu


def _mean_pointwise_conv_kernel(x_ref, w_ref, b_ref, o_ref):
    # x_ref: [1, C, HW]  (native NCHW view, spatial flattened)
    # w_ref: [Cout, C]   (pre-scaled by 1/(H*W); f32 or bf16)
    # b_ref: [Cout, 1]   (f32)
    # o_ref: [Cout, 1]   (one output column per batch element)
    x = x_ref[0].astype(w_ref.dtype)          # no-op for f32; cast for bf16 path
    # MXU: K=2064 contraction, M=Cout useful rows, N=HW columns.
    y = jnp.dot(w_ref[...], x, preferred_element_type=jnp.float32)   # [Cout, HW]
    # Lane reduction over HW (scale already folded into the weight) + bias.
    o_ref[...] = (jnp.sum(y, axis=1, keepdims=True) + b_ref[...]).astype(o_ref.dtype)


def mean_conv2d(x_nchw, w_oihw, b_o, *, weight_dtype=jnp.float32):
    """Equivalent of: Conv2d(Cin, Cout, 1)(x.mean((2,3), keepdim=True)).

    weight_dtype=jnp.bfloat16 halves the (largest) weight DMA on v6e/v7x while
    keeping f32 accumulation on the MXU.
    """
    N, C, H, W = x_nchw.shape
    Cout = w_oihw.shape[0]
    HW = H * W

    # Glue (all free / tiny): native-layout reshape of x, scale folded into W.
    x_chw = x_nchw.reshape(N, C, HW)                                   # free reshape
    w_scaled = (w_oihw.reshape(Cout, C) * (1.0 / HW)).astype(weight_dtype)
    b2 = b_o.reshape(Cout, 1).astype(jnp.float32)

    itemsize_w = jnp.dtype(weight_dtype).itemsize
    cost = pl.CostEstimate(
        flops=2 * N * Cout * C * HW,
        transcendentals=0,
        bytes_accessed=(x_chw.size * x_chw.dtype.itemsize
                        + w_scaled.size * itemsize_w
                        + b2.size * 4
                        + N * Cout * x_nchw.dtype.itemsize),
    )

    out = pl.pallas_call(
        _mean_pointwise_conv_kernel,
        out_shape=jax.ShapeDtypeStruct((Cout, N), x_nchw.dtype),
        grid=(N,),
        in_specs=[
            pl.BlockSpec((1, C, HW), lambda n: (n, 0, 0)),   # x: one batch slab per step
            pl.BlockSpec((Cout, C), lambda n: (0, 0)),       # weight (resident)
            pl.BlockSpec((Cout, 1), lambda n: (0, 0)),       # bias
        ],
        out_specs=pl.BlockSpec((Cout, 1), lambda n: (0, n)),
        compiler_params=pltpu.CompilerParams(
            dimension_semantics=("parallel",),
        ),
        cost_estimate=cost,
    )(x_chw, w_scaled, b2)

    # TODO(synk): on v7x, keep the weight resident across calls (cross-call
    # prefetch / fusion with the producer of x597) — per-call overhead dominates.
    # Tiny layout fixup (86*N floats) to match PyTorch [N, Cout, 1, 1].
    return jnp.transpose(out, (1, 0)).reshape(N, Cout, 1, 1)


if __name__ == "__main__":
    key = jax.random.PRNGKey(0)
    k_x, k_w, k_b = jax.random.split(key, 3)

    N, C_in, H, W = 1, 2064, 7, 7
    C_out = 86

    # Deterministic synthetic parameters (shapes from Conv2d(2064, 86, 1))
    x = jax.random.normal(k_x, (N, C_in, H, W), dtype=jnp.float32)
    w = jax.random.normal(k_w, (C_out, C_in, 1, 1), dtype=jnp.float32) * 0.02
    b = jax.random.normal(k_b, (C_out,), dtype=jnp.float32) * 0.02

    # Pure-JAX reference
    pooled_ref = jnp.mean(x, axis=(2, 3))                                 # [N, C]
    y_ref = (pooled_ref @ w.reshape(C_out, C_in).T + b).reshape(N, C_out, 1, 1)

    # f32 path (exact semantics)
    y_f32 = jax.block_until_ready(mean_conv2d(x, w, b))
    assert y_f32.shape == (N, C_out, 1, 1), y_f32.shape
    assert jnp.allclose(y_f32, y_ref, atol=1e-4, rtol=1e-4), \
        float(jnp.max(jnp.abs(y_f32 - y_ref)))

    # bf16-weight path (halved weight DMA, f32 accumulation) — looser tolerance.
    y_bf16 = jax.block_until_ready(mean_conv2d(x, w, b, weight_dtype=jnp.bfloat16))
    assert y_bf16.shape == (N, C_out, 1, 1), y_bf16.shape
    assert jnp.allclose(y_bf16, y_ref, atol=2e-2, rtol=2e-2), \
        float(jnp.max(jnp.abs(y_bf16 - y_ref)))

    print("KERNEL_OK")
</pallas_src>

<mosaic_0001>
module attributes {stable_mosaic.version = 11 : i64} {
  func.func @_mean_pointwise_conv_kernel(%arg0: i32, %arg1: memref<1x2064x49xf32, #tpu.memory_space<vmem>>, %arg2: memref<86x2064xf32, #tpu.memory_space<vmem>>, %arg3: memref<86x1xf32, #tpu.memory_space<vmem>>, %arg4: memref<86x1xf32, #tpu.memory_space<vmem>>) attributes {dimension_semantics = [#tpu.dimension_semantics<parallel>], iteration_bounds = array<i64: 1>, scalar_prefetch = 0 : i64, scratch_operands = 0 : i64, tpu.core_type = #tpu.core_type<tc>, window_params = [{transform_indices = @transform_0, window_bounds = array<i64: 1, 2064, 49>}, {pipeline_mode = #tpu.pipeline_mode<synchronous>, transform_indices = @transform_1, window_bounds = array<i64: 86, 2064>}, {pipeline_mode = #tpu.pipeline_mode<synchronous>, transform_indices = @transform_2, window_bounds = array<i64: 86, 1>}, {transform_indices = @transform_3, window_bounds = array<i64: 86, 1>}]} {
    %c0 = arith.constant 0 : index
    %c0_0 = arith.constant 0 : index
    %c0_1 = arith.constant 0 : index
    %0 = vector.load %arg1[%c0, %c0_0, %c0_1] : memref<1x2064x49xf32, #tpu.memory_space<vmem>>, vector<1x2064x49xf32>
    %1 = vector.shape_cast %0 : vector<1x2064x49xf32> to vector<2064x49xf32>
    %c0_2 = arith.constant 0 : index
    %c0_3 = arith.constant 0 : index
    %2 = vector.load %arg2[%c0_2, %c0_3] : memref<86x2064xf32, #tpu.memory_space<vmem>>, vector<86x2064xf32>
    %cst = arith.constant dense<0.000000e+00> : vector<86x49xf32>
    %3 = tpu.matmul %2, %1, %cst {dimension_numbers = #tpu.dot_dimension_numbers<[1], [0], [0], [1], [0, 0, 1, 1], [], []>} : vector<86x2064xf32>, vector<2064x49xf32>, vector<86x49xf32> -> vector<86x49xf32>
    %cst_4 = arith.constant dense<0.000000e+00> : vector<86xf32>
    %4 = vector.multi_reduction <add>, %3, %cst_4 [1] : vector<86x49xf32> to vector<86xf32>
    %5 = vector.shape_cast %4 : vector<86xf32> to vector<86x1xf32>
    %c0_5 = arith.constant 0 : index
    %c0_6 = arith.constant 0 : index
    %6 = vector.load %arg3[%c0_5, %c0_6] : memref<86x1xf32, #tpu.memory_space<vmem>>, vector<86x1xf32>
    %7 = arith.addf %5, %6 : vector<86x1xf32>
    %c0_7 = arith.constant 0 : index
    %c0_8 = arith.constant 0 : index
    %8 = vector.load %arg4[%c0_7, %c0_8] : memref<86x1xf32, #tpu.memory_space<vmem>>, vector<86x1xf32>
    tpu.vector_store %arg4[%c0_7, %c0_8], %7 {strides = array<i32>} : memref<86x1xf32, #tpu.memory_space<vmem>>, vector<86x1xf32>,
    return
  }
  func.func @transform_0(%arg0: i32) -> (i32, i32, i32) {
    %c0_i32 = arith.constant 0 : i32
    %c0_i32_0 = arith.constant 0 : i32
    %c0_i32_1 = arith.constant 0 : i32
    return %arg0, %c0_i32, %c0_i32_0 : i32, i32, i32
  }
  func.func @transform_1(%arg0: i32) -> (i32, i32) {
    %c0_i32 = arith.constant 0 : i32
    %c0_i32_0 = arith.constant 0 : i32
    %c0_i32_1 = arith.constant 0 : i32
    return %c0_i32, %c0_i32_0 : i32, i32
  }
  func.func @transform_2(%arg0: i32) -> (i32, i32) {
    %c0_i32 = arith.constant 0 : i32
    %c0_i32_0 = arith.constant 0 : i32
    %c0_i32_1 = arith.constant 0 : i32
    return %c0_i32, %c0_i32_0 : i32, i32
  }
  func.func @transform_3(%arg0: i32) -> (i32, i32) {
    %c0_i32 = arith.constant 0 : i32
    %c0_i32_0 = arith.constant 0 : i32
    return %c0_i32, %arg0 : i32, i32
  }
}

</mosaic_0001>

<bundles_post_ra>
// kernel: tpu_custom_call.1
= control target key start
LH: loop header
LB: loop body
LE: loop exit
PB: predicated region body
PF: predicated region fallthrough
CT: control target
= control target key end

     0   :  { %vm2235_vm0 = vmmov 0   ;;  %vm459_vm1 = vcmask 130048   ;;  %vm1573_vm2 = vcmask 400384   ;;  %vm1604_vm3 = vcmask 398336   ;;  %s3885_s0 = inlined_call_operand.vmem [shape: f32[1,2064,49], index: 0, kind: input, shape index: {}]   ;;  %s3886_s1 = inlined_call_operand.vmem [shape: f32[86,2064], index: 1, kind: input, shape index: {}]   ;;  %s3887_s2 = inlined_call_operand.vmem [shape: f32[86,1], index: 2, kind: input, shape index: {}]   ;;  %s3888_s3 = inlined_call_operand.vmem [shape: f32[86,1], index: 3, kind: output, shape index: {}]  }
   0x1   :  { %v45_v0 = vld [vmem:[%s3885_s0 + $0xf8] sm:$0xff]  ;;  %v44_v4 = vld [vmem:[%s3885_s0 + $0xf0] sm:$0xff]  ;;  %v43_v8 = vld [vmem:[%s3885_s0 + $0xe8] sm:$0xff]  ;;  %vm1630_vm4 = vcmask 7168   ;;  %vm1641_vm5 = vcmask 5120  }
   0x2   :  { %v77_v1 = vld [vmem:[%s3885_s0 + $0x1f8] sm:$0xff]  ;;  %1658 = vmatprep.subr.mxu0 %v45_v0  ;;  %v76_v5 = vld [vmem:[%s3885_s0 + $0x1f0] sm:$0xff]  ;;  %v75_v9 = vld [vmem:[%s3885_s0 + $0x1e8] sm:$0xff] }
   0x3   :  { %v29_v2 = vld [vmem:[%s3885_s0 + $0x78] sm:$0xff]  ;;  %1723 = vmatprep.subr.mxu1 %v77_v1  ;;  %v28_v6 = vld [vmem:[%s3885_s0 + $0x70] sm:$0xff]  ;;  %v27_v10 = vld [vmem:[%s3885_s0 + $0x68] sm:$0xff] }
   0x4   :  { %v61_v3 = vld [vmem:[%s3885_s0 + $0x178] sm:$0xff]  ;;  %1659 = vmatpush3.msra.mxu0 %v29_v2  ;;  %v60_v7 = vld [vmem:[%s3885_s0 + $0x170] sm:$0xff]  ;;  %v59_v11 = vld [vmem:[%s3885_s0 + $0x168] sm:$0xff] }
   0x5   :  { %1724 = vmatpush3.msra.mxu1 %v61_v3  ;;  %1660 = vmatprep.subr.mxu0 %v44_v4  ;;  %v42_v12 = vld [vmem:[%s3885_s0 + $0xe0] sm:$0xff]  ;;  %v41_v16 = vld [vmem:[%s3885_s0 + $0xd8] sm:$0xff]  ;;  %v40_v20 = vld [vmem:[%s3885_s0 + $0xd0] sm:$0xff] }
   0x6   :  { %1725 = vmatprep.subr.mxu1 %v76_v5  ;;  %1661 = vmatpush3.msra.mxu0 %v28_v6  ;;  %v74_v13 = vld [vmem:[%s3885_s0 + $0x1e0] sm:$0xff]  ;;  %v73_v17 = vld [vmem:[%s3885_s0 + $0x1d8] sm:$0xff]  ;;  %v72_v21 = vld [vmem:[%s3885_s0 + $0x1d0] sm:$0xff] }
   0x7   :  { %1726 = vmatpush3.msra.mxu1 %v60_v7  ;;  %1662 = vmatprep.subr.mxu0 %v43_v8  ;;  %v26_v14 = vld [vmem:[%s3885_s0 + $0x60] sm:$0xff]  ;;  %v25_v18 = vld [vmem:[%s3885_s0 + $0x58] sm:$0xff]  ;;  %v24_v22 = vld [vmem:[%s3885_s0 + $0x50] sm:$0xff] }
   0x8   :  { %1727 = vmatprep.subr.mxu1 %v75_v9  ;;  %v58_v15 = vld [vmem:[%s3885_s0 + $0x160] sm:$0xff]  ;;  %1663 = vmatpush3.msra.mxu0 %v27_v10  ;;  %v57_v19 = vld [vmem:[%s3885_s0 + $0x158] sm:$0xff]  ;;  %v56_v23 = vld [vmem:[%s3885_s0 + $0x150] sm:$0xff] }
   0x9   :  { %1728 = vmatpush3.msra.mxu1 %v59_v11  ;;  %1664 = vmatprep.subr.mxu0 %v42_v12  ;;  %v39_v24 = vld [vmem:[%s3885_s0 + $0xc8] sm:$0xff]  ;;  %v38_v28 = vld [vmem:[%s3885_s0 + $0xc0] sm:$0xff]  ;;  %v37_v32 = vld [vmem:[%s3885_s0 + $0xb8] sm:$0xff] }
   0xa   :  { %1729 = vmatprep.subr.mxu1 %v74_v13  ;;  %1665 = vmatpush3.msra.mxu0 %v26_v14  ;;  %v71_v25 = vld [vmem:[%s3885_s0 + $0x1c8] sm:$0xff]  ;;  %v70_v29 = vld [vmem:[%s3885_s0 + $0x1c0] sm:$0xff]  ;;  %v69_v33 = vld [vmem:[%s3885_s0 + $0x1b8] sm:$0xff] }
   0xb   :  { %1730 = vmatpush3.msra.mxu1 %v58_v15  ;;  %1666 = vmatprep.subr.mxu0 %v41_v16  ;;  %v23_v26 = vld [vmem:[%s3885_s0 + $0x48] sm:$0xff]  ;;  %v22_v30 = vld [vmem:[%s3885_s0 + $0x40] sm:$0xff]  ;;  %v21_v34 = vld [vmem:[%s3885_s0 + $0x38] sm:$0xff] }
   0xc   :  { %1731 = vmatprep.subr.mxu1 %v73_v17  ;;  %1667 = vmatpush3.msra.mxu0 %v25_v18  ;;  %v55_v27 = vld [vmem:[%s3885_s0 + $0x148] sm:$0xff]  ;;  %v54_v31 = vld [vmem:[%s3885_s0 + $0x140] sm:$0xff]  ;;  %v53_v35 = vld [vmem:[%s3885_s0 + $0x138] sm:$0xff] }
   0xd   :  { %1732 = vmatpush3.msra.mxu1 %v57_v19  ;;  %1668 = vmatprep.subr.mxu0 %v40_v20  ;;  %v36_v36 = vld [vmem:[%s3885_s0 + $0xb0] sm:$0xff]  ;;  %v35_v40 = vld [vmem:[%s3885_s0 + $0xa8] sm:$0xff]  ;;  %v34_v44 = vld [vmem:[%s3885_s0 + $0xa0] sm:$0xff] }
   0xe   :  { %1733 = vmatprep.subr.mxu1 %v72_v21  ;;  %1669 = vmatpush3.msra.mxu0 %v24_v22  ;;  %v68_v37 = vld [vmem:[%s3885_s0 + $0x1b0] sm:$0xff]  ;;  %v67_v41 = vld [vmem:[%s3885_s0 + $0x1a8] sm:$0xff]  ;;  %v66_v45 = vld [vmem:[%s3885_s0 + $0x1a0] sm:$0xff] }
   0xf   :  { %1734 = vmatpush3.msra.mxu1 %v56_v23  ;;  %1670 = vmatprep.subr.mxu0 %v39_v24  ;;  %v20_v38 = vld [vmem:[%s3885_s0 + $0x30] sm:$0xff]  ;;  %v19_v42 = vld [vmem:[%s3885_s0 + $0x28] sm:$0xff]  ;;  %v18_v46 = vld [vmem:[%s3885_s0 + $0x20] sm:$0xff] }
  0x10   :  { %1735 = vmatprep.subr.mxu1 %v71_v25  ;;  %1671 = vmatpush3.msra.mxu0 %v23_v26  ;;  %v52_v39 = vld [vmem:[%s3885_s0 + $0x130] sm:$0xff]  ;;  %v51_v43 = vld [vmem:[%s3885_s0 + $0x128] sm:$0xff]  ;;  %v50_v47 = vld [vmem:[%s3885_s0 + $0x120] sm:$0xff] }
  0x11   :  { %1736 = vmatpush3.msra.mxu1 %v55_v27  ;;  %1672 = vmatprep.subr.mxu0 %v38_v28  ;;  %v33_v48 = vld [vmem:[%s3885_s0 + $0x98] sm:$0xff]  ;;  %v32_v52 = vld [vmem:[%s3885_s0 + $0x90] sm:$0xff]  ;;  %v31_v56 = vld [vmem:[%s3885_s0 + $0x88] sm:$0xff] }
  0x12   :  { %1737 = vmatprep.subr.mxu1 %v70_v29  ;;  %1673 = vmatpush3.msra.mxu0 %v22_v30  ;;  %v65_v49 = vld [vmem:[%s3885_s0 + $0x198] sm:$0xff]  ;;  %v64_v53 = vld [vmem:[%s3885_s0 + $0x190] sm:$0xff]  ;;  %v63_v57 = vld [vmem:[%s3885_s0 + $0x188] sm:$0xff] }
  0x13   :  { %1738 = vmatpush3.msra.mxu1 %v54_v31  ;;  %1674 = vmatprep.subr.mxu0 %v37_v32  ;;  %v17_v50 = vld [vmem:[%s3885_s0 + $0x18] sm:$0xff]  ;;  %v16_v54 = vld [vmem:[%s3885_s0 + $0x10] sm:$0xff]  ;;  %v15_v58 = vld [vmem:[%s3885_s0 + $0x8] sm:$0xff] }
  0x14   :  { %1739 = vmatprep.subr.mxu1 %v69_v33  ;;  %1675 = vmatpush3.msra.mxu0 %v21_v34  ;;  %v49_v51 = vld [vmem:[%s3885_s0 + $0x118] sm:$0xff]  ;;  %v48_v55 = vld [vmem:[%s3885_s0 + $0x110] sm:$0xff]  ;;  %v47_v59 = vld [vmem:[%s3885_s0 + $0x108] sm:$0xff] }
  0x15   :  { %1740 = vmatpush3.msra.mxu1 %v53_v35  ;;  %1676 = vmatprep.subr.mxu0 %v36_v36  ;;  %v30_v60 = vld [vmem:[%s3885_s0 + $0x80] sm:$0xff]  ;;  %v273_v63 = vld [vmem:[%s3886_s1 + $0x8] sm:$0xff]  ;;  %v275_v1 = vld [vmem:[%s3886_s1 + $0x18] sm:$0xff] }
  0x16   :  { %1741 = vmatprep.subr.mxu1 %v68_v37  ;;  %1677 = vmatpush3.msra.mxu0 %v20_v38  ;;  %v62_v61 = vld [vmem:[%s3885_s0 + $0x180] sm:$0xff]  ;;  %v274_v3 = vld [vmem:[%s3886_s1 + $0x10] sm:$0xff]  ;;  %v109_v4 = vld [vmem:[%s3885_s0 + $0x2f8] sm:$0xff] }
  0x17   :  { %1742 = vmatpush3.msra.mxu1 %v52_v39  ;;  %1678 = vmatprep.subr.mxu0 %v35_v40  ;;  %v14_v62 = vld [vmem:[%s3885_s0] sm:$0xff]  ;;  %v290_v5 = vld [vmem:[%s3886_s1 + $0x90] sm:$0xff]  ;;  %v93_v6 = vld [vmem:[%s3885_s0 + $0x278] sm:$0xff] }
  0x18   :  { %1743 = vmatprep.subr.mxu1 %v67_v41  ;;  %1679 = vmatpush3.msra.mxu0 %v19_v42  ;;  %v46_v0 = vld [vmem:[%s3885_s0 + $0x100] sm:$0xff]  ;;  %v108_v8 = vld [vmem:[%s3885_s0 + $0x2f0] sm:$0xff]  ;;  %v141_v9 = vld [vmem:[%s3885_s0 + $0x3f8] sm:$0xff] }
  0x19   :  { %1744 = vmatpush3.msra.mxu1 %v51_v43  ;;  %1680 = vmatprep.subr.mxu0 %v34_v44  ;;  %v272_v2 = vld [vmem:[%s3886_s1] sm:$0xff]  ;;  %v289_v10 = vld [vmem:[%s3886_s1 + $0x88] sm:$0xff]  ;;  %v291_v11 = vld [vmem:[%s3886_s1 + $0x98] sm:$0xff] }
  0x1a   :  { %1745 = vmatprep.subr.mxu1 %v66_v45  ;;  %1681 = vmatpush3.msra.mxu0 %v18_v46  ;;  %v292_v7 = vld [vmem:[%s3886_s1 + $0xa0] sm:$0xff]  ;;  %v92_v12 = vld [vmem:[%s3885_s0 + $0x270] sm:$0xff]  ;;  %v125_v13 = vld [vmem:[%s3885_s0 + $0x378] sm:$0xff] }
  0x1b   :  { %1746 = vmatpush3.msra.mxu1 %v50_v47  ;;  %1682 = vmatprep.subr.mxu0 %v33_v48  ;;  %v107_v14 = vld [vmem:[%s3885_s0 + $0x2e8] sm:$0xff]  ;;  %v307_v15 = vld [vmem:[%s3886_s1 + $0x118] sm:$0xff]  ;;  %v140_v18 = vld [vmem:[%s3885_s0 + $0x3f0] sm:$0xff] }
  0x1c   :  { %1747 = vmatprep.subr.mxu1 %v65_v49  ;;  %1683 = vmatpush3.msra.mxu0 %v17_v50  ;;  %v309_v16 = vld [vmem:[%s3886_s1 + $0x128] sm:$0xff]  ;;  %v306_v19 = vld [vmem:[%s3886_s1 + $0x110] sm:$0xff]  ;;  %v308_v20 = vld [vmem:[%s3886_s1 + $0x120] sm:$0xff] }
  0x1d   :  { %1748 = vmatpush3.msra.mxu1 %v49_v51  ;;  %1684 = vmatprep.subr.mxu0 %v32_v52  ;;  %v91_v17 = vld [vmem:[%s3885_s0 + $0x268] sm:$0xff]  ;;  %v106_v21 = vld [vmem:[%s3885_s0 + $0x2e0] sm:$0xff]  ;;  %v124_v22 = vld [vmem:[%s3885_s0 + $0x370] sm:$0xff] }
  0x1e   :  { %1749 = vmatprep.subr.mxu1 %v64_v53  ;;  %1685 = vmatpush3.msra.mxu0 %v16_v54  ;;  %v90_v23 = vld [vmem:[%s3885_s0 + $0x260] sm:$0xff]  ;;  %v139_v24 = vld [vmem:[%s3885_s0 + $0x3e8] sm:$0xff]  ;;  %v326_v26 = vld [vmem:[%s3886_s1 + $0x1b0] sm:$0xff] }
  0x1f   :  { %1750 = vmatpush3.msra.mxu1 %v48_v55  ;;  %1686 = vmatprep.subr.mxu0 %v31_v56  ;;  %v324_v25 = vld [vmem:[%s3886_s1 + $0x1a0] sm:$0xff]  ;;  %v105_v27 = vld [vmem:[%s3885_s0 + $0x2d8] sm:$0xff]  ;;  %v123_v28 = vld [vmem:[%s3885_s0 + $0x368] sm:$0xff] }
  0x20   :  { %1751 = vmatprep.subr.mxu1 %v63_v57  ;;  %1687 = vmatpush3.msra.mxu0 %v15_v58  ;;  %v323_v29 = vld [vmem:[%s3886_s1 + $0x198] sm:$0xff]  ;;  %v325_v30 = vld [vmem:[%s3886_s1 + $0x1a8] sm:$0xff]  ;;  %v138_v32 = vld [vmem:[%s3885_s0 + $0x3e0] sm:$0xff] }
  0x21   :  { %1752 = vmatpush3.msra.mxu1 %v47_v59  ;;  %1688 = vmatprep.subr.mxu0 %v30_v60  ;;  %v89_v31 = vld [vmem:[%s3885_s0 + $0x258] sm:$0xff]  ;;  %v104_v33 = vld [vmem:[%s3885_s0 + $0x2d0] sm:$0xff]  ;;  %v122_v34 = vld [vmem:[%s3885_s0 + $0x360] sm:$0xff] }
  0x22   :  { %1753 = vmatprep.subr.mxu1 %v62_v61  ;;  %1689 = vmatpush3.msra.mxu0 %v14_v62  ;;  %v341_v35 = vld [vmem:[%s3886_s1 + $0x228] sm:$0xff]  ;;  %v343_v36 = vld [vmem:[%s3886_s1 + $0x238] sm:$0xff]  ;;  %v88_v37 = vld [vmem:[%s3885_s0 + $0x250] sm:$0xff] }
  0x23   :  { %557 = vmatprep.mubr.f32.mxu0 %v273_v63  ;;  %1754 = vmatpush3.msra.mxu1 %v46_v0  ;;  %v137_v38 = vld [vmem:[%s3885_s0 + $0x3d8] sm:$0xff]  ;;  %v340_v39 = vld [vmem:[%s3886_s1 + $0x220] sm:$0xff]  ;;  %v342_v40 = vld [vmem:[%s3886_s1 + $0x230] sm:$0xff] }
  0x24   :  { %677 = vmatprep.mubr.f32.mxu1 %v275_v1  ;;  %558 = vmatmul.mubr.f32.vlgmr.msra.gmra.mxu0 %v272_v2  ;;  %v103_v41 = vld [vmem:[%s3885_s0 + $0x2c8] sm:$0xff]  ;;  %v121_v42 = vld [vmem:[%s3885_s0 + $0x358] sm:$0xff]  ;;  %v136_v44 = vld [vmem:[%s3885_s0 + $0x3d0] sm:$0xff] }
  0x25   :  { %678 = vmatmul.mubr.f32.vlgmr.msra.gmra.mxu1 %v274_v3  ;;  %1788 = vmatprep.subr.mxu0 %v109_v4  ;;  %v87_v43 = vld [vmem:[%s3885_s0 + $0x248] sm:$0xff]  ;;  %v358_v45 = vld [vmem:[%s3886_s1 + $0x2b0] sm:$0xff]  ;;  %v360_v46 = vld [vmem:[%s3886_s1 + $0x2c0] sm:$0xff] }
  0x26   :  { %562 = vmatprep.mubr.f32.mxu0 %v290_v5  ;;  %1789 = vmatpush3.msra.mxu0 %v93_v6  ;;  %v120_v47 = vld [vmem:[%s3885_s0 + $0x350] sm:$0xff]  ;;  %v357_v48 = vld [vmem:[%s3886_s1 + $0x2a8] sm:$0xff]  ;;  %v359_v49 = vld [vmem:[%s3886_s1 + $0x2b8] sm:$0xff] }
  0x27   :  { %682 = vmatprep.mubr.f32.mxu1 %v292_v7  ;;  %1790 = vmatprep.subr.mxu0 %v108_v8  ;;  %v102_v50 = vld [vmem:[%s3885_s0 + $0x2c0] sm:$0xff]  ;;  %v135_v51 = vld [vmem:[%s3885_s0 + $0x3c8] sm:$0xff]  ;;  %v101_v54 = vld [vmem:[%s3885_s0 + $0x2b8] sm:$0xff] }
  0x28   :  { %1853 = vmatprep.subr.mxu1 %v141_v9  ;;  %563 = vmatmul.mubr.f32.gmra.mxu0 %v289_v10  ;;  %v86_v52 = vld [vmem:[%s3885_s0 + $0x240] sm:$0xff]  ;;  %v119_v53 = vld [vmem:[%s3885_s0 + $0x348] sm:$0xff]  ;;  %v375_v55 = vld [vmem:[%s3886_s1 + $0x338] sm:$0xff] }
  0x29   :  { %683 = vmatmul.mubr.f32.gmra.mxu1 %v291_v11  ;;  %1791 = vmatpush3.msra.mxu0 %v92_v12  ;;  %v377_v56 = vld [vmem:[%s3886_s1 + $0x348] sm:$0xff]  ;;  %v85_v57 = vld [vmem:[%s3885_s0 + $0x238] sm:$0xff]  ;;  %v374_v58 = vld [vmem:[%s3886_s1 + $0x330] sm:$0xff] }
  0x2a   :  { %1854 = vmatpush3.msra.mxu1 %v125_v13  ;;  %1792 = vmatprep.subr.mxu0 %v107_v14  ;;  %v376_v59 = vld [vmem:[%s3886_s1 + $0x340] sm:$0xff]  ;;  %v100_v61 = vld [vmem:[%s3885_s0 + $0x2b0] sm:$0xff]  ;;  %v133_v0 = vld [vmem:[%s3885_s0 + $0x3b8] sm:$0xff] }
  0x2b   :  { %567 = vmatprep.mubr.f32.mxu0 %v307_v15  ;;  %687 = vmatprep.mubr.f32.mxu1 %v309_v16  ;;  %v134_v60 = vld [vmem:[%s3885_s0 + $0x3c0] sm:$0xff]  ;;  %v84_v63 = vld [vmem:[%s3885_s0 + $0x230] sm:$0xff]  ;;  %v117_v3 = vld [vmem:[%s3885_s0 + $0x338] sm:$0xff] }
  0x2c   :  { %1793 = vmatpush3.msra.mxu0 %v91_v17  ;;  %1855 = vmatprep.subr.mxu1 %v140_v18  ;;  %v118_v62 = vld [vmem:[%s3885_s0 + $0x340] sm:$0xff]  ;;  %v394_v2 = vld [vmem:[%s3886_s1 + $0x3d0] sm:$0xff]  ;;  %v391_v4 = vld [vmem:[%s3886_s1 + $0x3b8] sm:$0xff] }
  0x2d   :  { %568 = vmatmul.mubr.f32.gmra.mxu0 %v306_v19  ;;  %688 = vmatmul.mubr.f32.gmra.mxu1 %v308_v20  ;;  %v392_v1 = vld [vmem:[%s3886_s1 + $0x3c0] sm:$0xff]  ;;  %v393_v5 = vld [vmem:[%s3886_s1 + $0x3c8] sm:$0xff]  ;;  %v132_v7 = vld [vmem:[%s3885_s0 + $0x3b0] sm:$0xff] }
  0x2e   :  { %1794 = vmatprep.subr.mxu0 %v106_v21  ;;  %1856 = vmatpush3.msra.mxu1 %v124_v22  ;;  %v99_v6 = vld [vmem:[%s3885_s0 + $0x2a8] sm:$0xff]  ;;  %v116_v9 = vld [vmem:[%s3885_s0 + $0x330] sm:$0xff]  ;;  %v411_v11 = vld [vmem:[%s3886_s1 + $0x458] sm:$0xff] }
  0x2f   :  { %1795 = vmatpush3.msra.mxu0 %v90_v23  ;;  %1857 = vmatprep.subr.mxu1 %v139_v24  ;;  %v83_v8 = vld [vmem:[%s3885_s0 + $0x228] sm:$0xff]  ;;  %v98_v12 = vld [vmem:[%s3885_s0 + $0x2a0] sm:$0xff]  ;;  %v410_v14 = vld [vmem:[%s3886_s1 + $0x450] sm:$0xff] }
  0x30   :  { %572 = vmatprep.mubr.f32.mxu0 %v324_v25  ;;  %692 = vmatprep.mubr.f32.mxu1 %v326_v26  ;;  %v409_v10 = vld [vmem:[%s3886_s1 + $0x448] sm:$0xff]  ;;  %v408_v13 = vld [vmem:[%s3886_s1 + $0x440] sm:$0xff]  ;;  %v97_v17 = vld [vmem:[%s3885_s0 + $0x298] sm:$0xff] }
  0x31   :  { %1796 = vmatprep.subr.mxu0 %v105_v27  ;;  %1858 = vmatpush3.msra.mxu1 %v123_v28  ;;  %v82_v15 = vld [vmem:[%s3885_s0 + $0x220] sm:$0xff]  ;;  %v131_v16 = vld [vmem:[%s3885_s0 + $0x3a8] sm:$0xff]  ;;  %v81_v19 = vld [vmem:[%s3885_s0 + $0x218] sm:$0xff] }
  0x32   :  { %573 = vmatmul.mubr.f32.gmra.mxu0 %v323_v29  ;;  %693 = vmatmul.mubr.f32.gmra.mxu1 %v325_v30  ;;  %v115_v18 = vld [vmem:[%s3885_s0 + $0x328] sm:$0xff]  ;;  %v130_v20 = vld [vmem:[%s3885_s0 + $0x3a0] sm:$0xff]  ;;  %v426_v21 = vld [vmem:[%s3886_s1 + $0x4d0] sm:$0xff] }
  0x33   :  { %1797 = vmatpush3.msra.mxu0 %v89_v31  ;;  %1859 = vmatprep.subr.mxu1 %v138_v32  ;;  %v428_v22 = vld [vmem:[%s3886_s1 + $0x4e0] sm:$0xff]  ;;  %v425_v24 = vld [vmem:[%s3886_s1 + $0x4c8] sm:$0xff]  ;;  %v427_v25 = vld [vmem:[%s3886_s1 + $0x4d8] sm:$0xff] }
  0x34   :  { %1798 = vmatprep.subr.mxu0 %v104_v33  ;;  %1860 = vmatpush3.msra.mxu1 %v122_v34  ;;  %v114_v23 = vld [vmem:[%s3885_s0 + $0x320] sm:$0xff]  ;;  %v96_v26 = vld [vmem:[%s3885_s0 + $0x290] sm:$0xff]  ;;  %v129_v27 = vld [vmem:[%s3885_s0 + $0x398] sm:$0xff] }
  0x35   :  { %577 = vmatprep.mubr.f32.mxu0 %v341_v35  ;;  %697 = vmatprep.mubr.f32.mxu1 %v343_v36  ;;  %v80_v28 = vld [vmem:[%s3885_s0 + $0x210] sm:$0xff]  ;;  %v113_v29 = vld [vmem:[%s3885_s0 + $0x318] sm:$0xff]  ;;  %v445_v32 = vld [vmem:[%s3886_s1 + $0x568] sm:$0x3f] }
  0x36   :  { %1799 = vmatpush3.msra.mxu0 %v88_v37  ;;  %1861 = vmatprep.subr.mxu1 %v137_v38  ;;  %v128_v30 = vld [vmem:[%s3885_s0 + $0x390] sm:$0xff]  ;;  %v443_v31 = vld [vmem:[%s3886_s1 + $0x558] sm:$0x3f]  ;;  %v95_v33 = vld [vmem:[%s3885_s0 + $0x288] sm:$0xff] }
  0x37   :  { %578 = vmatmul.mubr.f32.gmra.mxu0 %v340_v39  ;;  %698 = vmatmul.mubr.f32.gmra.mxu1 %v342_v40  ;;  %v112_v34 = vld [vmem:[%s3885_s0 + $0x310] sm:$0xff]  ;;  %v444_v36 = vld [vmem:[%s3886_s1 + $0x560] sm:$0x3f]  ;;  %v79_v37 = vld [vmem:[%s3885_s0 + $0x208] sm:$0xff] }
  0x38   :  { %1800 = vmatprep.subr.mxu0 %v103_v41  ;;  %1862 = vmatpush3.msra.mxu1 %v121_v42  ;;  %v442_v35 = vld [vmem:[%s3886_s1 + $0x550] sm:$0x3f]  ;;  %v127_v38 = vld [vmem:[%s3885_s0 + $0x388] sm:$0xff]  ;;  %v94_v39 = vld [vmem:[%s3885_s0 + $0x280] sm:$0xff] }
  0x39   :  { %1801 = vmatpush3.msra.mxu0 %v87_v43  ;;  %1863 = vmatprep.subr.mxu1 %v136_v44  ;;  %v111_v40 = vld [vmem:[%s3885_s0 + $0x308] sm:$0xff]  ;;  %v78_v41 = vld [vmem:[%s3885_s0 + $0x200] sm:$0xff] }
  0x3a   :  { %582 = vmatprep.mubr.f32.mxu0 %v358_v45  ;;  %702 = vmatprep.mubr.f32.mxu1 %v360_v46  ;;  %v126_v42 = vld [vmem:[%s3885_s0 + $0x380] sm:$0xff]  ;;  %v277_v43 = vld [vmem:[%s3886_s1 + $0x28] sm:$0xff]  ;;  %v279_v45 = vld [vmem:[%s3886_s1 + $0x38] sm:$0xff] }
  0x3b   :  { %1864 = vmatpush3.msra.mxu1 %v120_v47  ;;  %583 = vmatmul.mubr.f32.gmra.mxu0 %v357_v48  ;;  %v110_v44 = vld [vmem:[%s3885_s0 + $0x300] sm:$0xff]  ;;  %v278_v47 = vld [vmem:[%s3886_s1 + $0x30] sm:$0xff]  ;;  %v173_v48 = vld [vmem:[%s3885_s0 + $0x4f8] sm:$0xff] }
  0x3c   :  { %703 = vmatmul.mubr.f32.gmra.mxu1 %v359_v49  ;;  %1802 = vmatprep.subr.mxu0 %v102_v50  ;;  %v276_v46 = vld [vmem:[%s3886_s1 + $0x20] sm:$0xff]  ;;  %v294_v49 = vld [vmem:[%s3886_s1 + $0xb0] sm:$0xff]  ;;  %v157_v50 = vld [vmem:[%s3885_s0 + $0x478] sm:$0xff] }
  0x3d   :  { %1865 = vmatprep.subr.mxu1 %v135_v51  ;;  %1803 = vmatpush3.msra.mxu0 %v86_v52  ;;  %v296_v51 = vld [vmem:[%s3886_s1 + $0xc0] sm:$0xff]  ;;  %v172_v52 = vld [vmem:[%s3885_s0 + $0x4f0] sm:$0xff] }
  0x3e   :  { %1866 = vmatpush3.msra.mxu1 %v119_v53  ;;  %1804 = vmatprep.subr.mxu0 %v101_v54  ;;  %v205_v53 = vld [vmem:[%s3885_s0 + $0x5f8] sm:$0xff]  ;;  %v293_v54 = vld [vmem:[%s3886_s1 + $0xa8] sm:$0xff] }
  0x3f   :  { %587 = vmatprep.mubr.f32.mxu0 %v375_v55  ;;  %707 = vmatprep.mubr.f32.mxu1 %v377_v56  ;;  %v295_v55 = vld [vmem:[%s3886_s1 + $0xb8] sm:$0xff]  ;;  %v156_v56 = vld [vmem:[%s3885_s0 + $0x470] sm:$0xff] }
  0x40   :  { %1805 = vmatpush3.msra.mxu0 %v85_v57  ;;  %708 = vmatmul.mubr.f32.gmra.mxu1 %v376_v59  ;;  %v189_v57 = vld [vmem:[%s3885_s0 + $0x578] sm:$0xff] }
  0x41   :  { %588 = vmatmul.mubr.f32.gmra.mxu0 %v374_v58  ;;  %1867 = vmatprep.subr.mxu1 %v134_v60  ;;  %v171_v58 = vld [vmem:[%s3885_s0 + $0x4e8] sm:$0xff]  ;;  %v311_v59 = vld [vmem:[%s3886_s1 + $0x138] sm:$0xff] }
  0x42   :  { %1806 = vmatprep.subr.mxu0 %v100_v61  ;;  %1868 = vmatpush3.msra.mxu1 %v118_v62  ;;  %v313_v60 = vld [vmem:[%s3886_s1 + $0x148] sm:$0xff]  ;;  %v204_v62 = vld [vmem:[%s3885_s0 + $0x5f0] sm:$0xff] }
  0x43   :  { %1807 = vmatpush3.msra.mxu0 %v84_v63  ;;  %1869 = vmatprep.subr.mxu1 %v133_v0  ;;  %v155_v61 = vld [vmem:[%s3885_s0 + $0x468] sm:$0xff]  ;;  %v310_v63 = vld [vmem:[%s3886_s1 + $0x130] sm:$0xff]  ;;  %v312_v0 = vld [vmem:[%s3886_s1 + $0x140] sm:$0xff] }
  0x44   :  { %592 = vmatprep.mubr.f32.mxu0 %v392_v1  ;;  %712 = vmatprep.mubr.f32.mxu1 %v394_v2  ;;  %v170_v1 = vld [vmem:[%s3885_s0 + $0x4e0] sm:$0xff]  ;;  %v188_v2 = vld [vmem:[%s3885_s0 + $0x570] sm:$0xff] }
  0x45   :  { %1870 = vmatpush3.msra.mxu1 %v117_v3  ;;  %593 = vmatmul.mubr.f32.gmra.mxu0 %v391_v4  ;;  %v154_v3 = vld [vmem:[%s3885_s0 + $0x460] sm:$0xff]  ;;  %v203_v4 = vld [vmem:[%s3885_s0 + $0x5e8] sm:$0xff] }
  0x46   :  { %713 = vmatmul.mubr.f32.gmra.mxu1 %v393_v5  ;;  %1808 = vmatprep.subr.mxu0 %v99_v6  ;;  %v328_v5 = vld [vmem:[%s3886_s1 + $0x1c0] sm:$0xff]  ;;  %v330_v6 = vld [vmem:[%s3886_s1 + $0x1d0] sm:$0xff] }
  0x47   :  { %1871 = vmatprep.subr.mxu1 %v132_v7  ;;  %1809 = vmatpush3.msra.mxu0 %v83_v8  ;;  %v169_v7 = vld [vmem:[%s3885_s0 + $0x4d8] sm:$0xff]  ;;  %v187_v8 = vld [vmem:[%s3885_s0 + $0x568] sm:$0xff] }
  0x48   :  { %1872 = vmatpush3.msra.mxu1 %v116_v9  ;;  %597 = vmatprep.mubr.f32.mxu0 %v409_v10  ;;  %v327_v9 = vld [vmem:[%s3886_s1 + $0x1b8] sm:$0xff]  ;;  %v329_v10 = vld [vmem:[%s3886_s1 + $0x1c8] sm:$0xff] }
  0x49   :  { %717 = vmatprep.mubr.f32.mxu1 %v411_v11  ;;  %1810 = vmatprep.subr.mxu0 %v98_v12  ;;  %v153_v11 = vld [vmem:[%s3885_s0 + $0x458] sm:$0xff]  ;;  %v202_v12 = vld [vmem:[%s3885_s0 + $0x5e0] sm:$0xff] }
  0x4a   :  { %598 = vmatmul.mubr.f32.gmra.mxu0 %v408_v13  ;;  %718 = vmatmul.mubr.f32.gmra.mxu1 %v410_v14  ;;  %v168_v13 = vld [vmem:[%s3885_s0 + $0x4d0] sm:$0xff]  ;;  %v186_v14 = vld [vmem:[%s3885_s0 + $0x560] sm:$0xff] }
  0x4b   :  { %1811 = vmatpush3.msra.mxu0 %v82_v15  ;;  %1873 = vmatprep.subr.mxu1 %v131_v16  ;;  %v345_v15 = vld [vmem:[%s3886_s1 + $0x248] sm:$0xff]  ;;  %v347_v16 = vld [vmem:[%s3886_s1 + $0x258] sm:$0xff] }
  0x4c   :  { %1812 = vmatprep.subr.mxu0 %v97_v17  ;;  %1874 = vmatpush3.msra.mxu1 %v115_v18  ;;  %v152_v17 = vld [vmem:[%s3885_s0 + $0x450] sm:$0xff]  ;;  %v201_v18 = vld [vmem:[%s3885_s0 + $0x5d8] sm:$0xff] }
  0x4d   :  { %1813 = vmatpush3.msra.mxu0 %v81_v19  ;;  %1875 = vmatprep.subr.mxu1 %v130_v20  ;;  %v344_v19 = vld [vmem:[%s3886_s1 + $0x240] sm:$0xff]  ;;  %v346_v20 = vld [vmem:[%s3886_s1 + $0x250] sm:$0xff] }
  0x4e   :  { %602 = vmatprep.mubr.f32.mxu0 %v426_v21  ;;  %722 = vmatprep.mubr.f32.mxu1 %v428_v22  ;;  %v167_v21 = vld [vmem:[%s3885_s0 + $0x4c8] sm:$0xff]  ;;  %v185_v22 = vld [vmem:[%s3885_s0 + $0x558] sm:$0xff] }
  0x4f   :  { %1876 = vmatpush3.msra.mxu1 %v114_v23  ;;  %603 = vmatmul.mubr.f32.gmra.mxu0 %v425_v24  ;;  %v151_v23 = vld [vmem:[%s3885_s0 + $0x448] sm:$0xff]  ;;  %v200_v24 = vld [vmem:[%s3885_s0 + $0x5d0] sm:$0xff] }
  0x50   :  { %723 = vmatmul.mubr.f32.gmra.mxu1 %v427_v25  ;;  %1814 = vmatprep.subr.mxu0 %v96_v26  ;;  %v362_v25 = vld [vmem:[%s3886_s1 + $0x2d0] sm:$0xff]  ;;  %v364_v26 = vld [vmem:[%s3886_s1 + $0x2e0] sm:$0xff] }
  0x51   :  { %1877 = vmatprep.subr.mxu1 %v129_v27  ;;  %1815 = vmatpush3.msra.mxu0 %v80_v28  ;;  %v184_v27 = vld [vmem:[%s3885_s0 + $0x550] sm:$0xff]  ;;  %v361_v28 = vld [vmem:[%s3886_s1 + $0x2c8] sm:$0xff] }
  0x52   :  { %1878 = vmatpush3.msra.mxu1 %v113_v29  ;;  %607 = vmatprep.mubr.f32.mxu0 %v443_v31  ;;  %v363_v29 = vld [vmem:[%s3886_s1 + $0x2d8] sm:$0xff]  ;;  %v199_v31 = vld [vmem:[%s3885_s0 + $0x5c8] sm:$0xff] }
  0x53   :  { %1879 = vmatprep.subr.mxu1 %v128_v30  ;;  %727 = vmatprep.mubr.f32.mxu1 %v445_v32  ;;  %v166_v30 = vld [vmem:[%s3885_s0 + $0x4c0] sm:$0xff] }
  0x54   :  { %1816 = vmatprep.subr.mxu0 %v95_v33  ;;  %1880 = vmatpush3.msra.mxu1 %v112_v34  ;;  %v150_v32 = vld [vmem:[%s3885_s0 + $0x440] sm:$0xff]  ;;  %v183_v33 = vld [vmem:[%s3885_s0 + $0x548] sm:$0xff]  ;;  %v165_v34 = vld [vmem:[%s3885_s0 + $0x4b8] sm:$0xff] }
  0x55   :  { %608 = vmatmul.mubr.f32.gmra.mxu0 %v442_v35  ;;  %728 = vmatmul.mubr.f32.gmra.mxu1 %v444_v36  ;;  %v379_v35 = vld [vmem:[%s3886_s1 + $0x358] sm:$0xff]  ;;  %v381_v36 = vld [vmem:[%s3886_s1 + $0x368] sm:$0xff] }
  0x56   :  { %1817 = vmatpush3.msra.mxu0 %v79_v37  ;;  %1881 = vmatprep.subr.mxu1 %v127_v38  ;;  %v149_v37 = vld [vmem:[%s3885_s0 + $0x438] sm:$0xff]  ;;  %v378_v38 = vld [vmem:[%s3886_s1 + $0x350] sm:$0xff] }
  0x57   :  { %1818 = vmatprep.subr.mxu0 %v94_v39  ;;  %1882 = vmatpush3.msra.mxu1 %v111_v40  ;;  %v380_v39 = vld [vmem:[%s3886_s1 + $0x360] sm:$0xff] }
  0x58   :  { %1819 = vmatpush3.msra.mxu0 %v78_v41  ;;  %1883 = vmatprep.subr.mxu1 %v126_v42  ;;  %v198_v40 = vld [vmem:[%s3885_s0 + $0x5c0] sm:$0xff]  ;;  %v164_v41 = vld [vmem:[%s3885_s0 + $0x4b0] sm:$0xff] }
  0x59   :  { %797 = vmatprep.mubr.f32.mxu0 %v277_v43  ;;  %1884 = vmatpush3.msra.mxu1 %v110_v44  ;;  %v182_v42 = vld [vmem:[%s3885_s0 + $0x540] sm:$0xff]  ;;  %v148_v43 = vld [vmem:[%s3885_s0 + $0x430] sm:$0xff]  ;;  %v197_v44 = vld [vmem:[%s3885_s0 + $0x5b8] sm:$0xff] }
  0x5a   :  { %917 = vmatprep.mubr.f32.mxu1 %v279_v45  ;;  %798 = vmatmul.mubr.f32.vlgmr.msra.gmra.mxu0 %v276_v46  ;;  %v396_v45 = vld [vmem:[%s3886_s1 + $0x3e0] sm:$0xff]  ;;  %v398_v46 = vld [vmem:[%s3886_s1 + $0x3f0] sm:$0xff] }
  0x5b   :  { %918 = vmatmul.mubr.f32.vlgmr.msra.gmra.mxu1 %v278_v47  ;;  %1918 = vmatprep.subr.mxu0 %v173_v48  ;;  %v181_v47 = vld [vmem:[%s3885_s0 + $0x538] sm:$0xff] }
  0x5c   :  { %802 = vmatprep.mubr.f32.mxu0 %v294_v49  ;;  %1919 = vmatpush3.msra.mxu0 %v157_v50  ;;  %v395_v48 = vld [vmem:[%s3886_s1 + $0x3d8] sm:$0xff]  ;;  %v397_v49 = vld [vmem:[%s3886_s1 + $0x3e8] sm:$0xff] }
  0x5d   :  { %922 = vmatprep.mubr.f32.mxu1 %v296_v51  ;;  %1920 = vmatprep.subr.mxu0 %v172_v52  ;;  %v163_v50 = vld [vmem:[%s3885_s0 + $0x4a8] sm:$0xff]  ;;  %v196_v51 = vld [vmem:[%s3885_s0 + $0x5b0] sm:$0xff] }
  0x5e   :  { %1983 = vmatprep.subr.mxu1 %v205_v53  ;;  %803 = vmatmul.mubr.f32.gmra.mxu0 %v293_v54  ;;  %v147_v52 = vld [vmem:[%s3885_s0 + $0x428] sm:$0xff]  ;;  %v180_v53 = vld [vmem:[%s3885_s0 + $0x530] sm:$0xff] }
  0x5f   :  { %923 = vmatmul.mubr.f32.gmra.mxu1 %v295_v55  ;;  %1921 = vmatpush3.msra.mxu0 %v156_v56  ;;  %v413_v54 = vld [vmem:[%s3886_s1 + $0x468] sm:$0xff]  ;;  %v415_v55 = vld [vmem:[%s3886_s1 + $0x478] sm:$0xff]  ;;  %v162_v56 = vld [vmem:[%s3885_s0 + $0x4a0] sm:$0xff] }
  0x60   :  { %1984 = vmatpush3.msra.mxu1 %v189_v57  ;;  %1922 = vmatprep.subr.mxu0 %v171_v58  ;;  %v412_v57 = vld [vmem:[%s3886_s1 + $0x460] sm:$0xff]  ;;  %v414_v58 = vld [vmem:[%s3886_s1 + $0x470] sm:$0xff] }
  0x61   :  { %807 = vmatprep.mubr.f32.mxu0 %v311_v59  ;;  %927 = vmatprep.mubr.f32.mxu1 %v313_v60  ;;  %v146_v59 = vld [vmem:[%s3885_s0 + $0x420] sm:$0xff]  ;;  %v195_v60 = vld [vmem:[%s3885_s0 + $0x5a8] sm:$0xff] }
  0x62   :  { %1923 = vmatpush3.msra.mxu0 %v155_v61  ;;  %1985 = vmatprep.subr.mxu1 %v204_v62  ;;  %v161_v61 = vld [vmem:[%s3885_s0 + $0x498] sm:$0xff]  ;;  %v179_v62 = vld [vmem:[%s3885_s0 + $0x528] sm:$0xff] }
  0x63   :  { %808 = vmatmul.mubr.f32.gmra.mxu0 %v310_v63  ;;  %928 = vmatmul.mubr.f32.gmra.mxu1 %v312_v0  ;;  %v145_v63 = vld [vmem:[%s3885_s0 + $0x418] sm:$0xff]  ;;  %v194_v0 = vld [vmem:[%s3885_s0 + $0x5a0] sm:$0xff] }
  0x64   :  { %1924 = vmatprep.subr.mxu0 %v170_v1  ;;  %1986 = vmatpush3.msra.mxu1 %v188_v2  ;;  %v430_v1 = vld [vmem:[%s3886_s1 + $0x4f0] sm:$0xff]  ;;  %v432_v2 = vld [vmem:[%s3886_s1 + $0x500] sm:$0xff] }
  0x65   :  { %1925 = vmatpush3.msra.mxu0 %v154_v3  ;;  %1987 = vmatprep.subr.mxu1 %v203_v4  ;;  %v178_v3 = vld [vmem:[%s3885_s0 + $0x520] sm:$0xff]  ;;  %v429_v4 = vld [vmem:[%s3886_s1 + $0x4e8] sm:$0xff] }
  0x66   :  { %812 = vmatprep.mubr.f32.mxu0 %v328_v5  ;;  %932 = vmatprep.mubr.f32.mxu1 %v330_v6  ;;  %v431_v5 = vld [vmem:[%s3886_s1 + $0x4f8] sm:$0xff]  ;;  %v160_v6 = vld [vmem:[%s3885_s0 + $0x490] sm:$0xff] }
  0x67   :  { %1926 = vmatprep.subr.mxu0 %v169_v7  ;;  %1988 = vmatpush3.msra.mxu1 %v187_v8  ;;  %v193_v7 = vld [vmem:[%s3885_s0 + $0x598] sm:$0xff]  ;;  %v144_v8 = vld [vmem:[%s3885_s0 + $0x410] sm:$0xff] }
  0x68   :  { %813 = vmatmul.mubr.f32.gmra.mxu0 %v327_v9  ;;  %933 = vmatmul.mubr.f32.gmra.mxu1 %v329_v10  ;;  %v177_v9 = vld [vmem:[%s3885_s0 + $0x518] sm:$0xff]  ;;  %v192_v10 = vld [vmem:[%s3885_s0 + $0x590] sm:$0xff] }
  0x69   :  { %1927 = vmatpush3.msra.mxu0 %v153_v11  ;;  %1989 = vmatprep.subr.mxu1 %v202_v12  ;;  %v447_v11 = vld [vmem:[%s3886_s1 + $0x578] sm:$0x3f]  ;;  %v449_v12 = vld [vmem:[%s3886_s1 + $0x588] sm:$0x3f] }
  0x6a   :  { %1928 = vmatprep.subr.mxu0 %v168_v13  ;;  %1990 = vmatpush3.msra.mxu1 %v186_v14  ;;  %v159_v13 = vld [vmem:[%s3885_s0 + $0x488] sm:$0xff]  ;;  %v176_v14 = vld [vmem:[%s3885_s0 + $0x510] sm:$0xff] }
  0x6b   :  { %817 = vmatprep.mubr.f32.mxu0 %v345_v15  ;;  %937 = vmatprep.mubr.f32.mxu1 %v347_v16  ;;  %v446_v15 = vld [vmem:[%s3886_s1 + $0x570] sm:$0x3f]  ;;  %v448_v16 = vld [vmem:[%s3886_s1 + $0x580] sm:$0x3f] }
  0x6c   :  { %1929 = vmatpush3.msra.mxu0 %v152_v17  ;;  %1991 = vmatprep.subr.mxu1 %v201_v18  ;;  %v143_v17 = vld [vmem:[%s3885_s0 + $0x408] sm:$0xff] }
  0x6d   :  { %818 = vmatmul.mubr.f32.gmra.mxu0 %v344_v19  ;;  %938 = vmatmul.mubr.f32.gmra.mxu1 %v346_v20  ;;  %v191_v18 = vld [vmem:[%s3885_s0 + $0x588] sm:$0xff]  ;;  %v158_v19 = vld [vmem:[%s3885_s0 + $0x480] sm:$0xff] }
  0x6e   :  { %1930 = vmatprep.subr.mxu0 %v167_v21  ;;  %1992 = vmatpush3.msra.mxu1 %v185_v22  ;;  %v175_v20 = vld [vmem:[%s3885_s0 + $0x508] sm:$0xff]  ;;  %v142_v21 = vld [vmem:[%s3885_s0 + $0x400] sm:$0xff] }
  0x6f   :  { %1931 = vmatpush3.msra.mxu0 %v151_v23  ;;  %1993 = vmatprep.subr.mxu1 %v200_v24  ;;  %v190_v22 = vld [vmem:[%s3885_s0 + $0x580] sm:$0xff]  ;;  %v281_v23 = vld [vmem:[%s3886_s1 + $0x48] sm:$0xff] }
  0x70   :  { %822 = vmatprep.mubr.f32.mxu0 %v362_v25  ;;  %942 = vmatprep.mubr.f32.mxu1 %v364_v26  ;;  %v174_v24 = vld [vmem:[%s3885_s0 + $0x500] sm:$0xff]  ;;  %v283_v25 = vld [vmem:[%s3886_s1 + $0x58] sm:$0xff] }
  0x71   :  { %1994 = vmatpush3.msra.mxu1 %v184_v27  ;;  %823 = vmatmul.mubr.f32.gmra.mxu0 %v361_v28  ;;  %v280_v26 = vld [vmem:[%s3886_s1 + $0x40] sm:$0xff]  ;;  %v282_v27 = vld [vmem:[%s3886_s1 + $0x50] sm:$0xff]  ;;  %v237_v28 = vld [vmem:[%s3885_s0 + $0x6f8] sm:$0xff] }
  0x72   :  { %943 = vmatmul.mubr.f32.gmra.mxu1 %v363_v29  ;;  %1932 = vmatprep.subr.mxu0 %v166_v30  ;;  %v298_v29 = vld [vmem:[%s3886_s1 + $0xd0] sm:$0xff]  ;;  %v221_v30 = vld [vmem:[%s3885_s0 + $0x678] sm:$0xff] }
  0x73   :  { %1995 = vmatprep.subr.mxu1 %v199_v31  ;;  %1933 = vmatpush3.msra.mxu0 %v150_v32  ;;  %v300_v31 = vld [vmem:[%s3886_s1 + $0xe0] sm:$0xff]  ;;  %v236_v32 = vld [vmem:[%s3885_s0 + $0x6f0] sm:$0xff] }
  0x74   :  { %1996 = vmatpush3.msra.mxu1 %v183_v33  ;;  %1934 = vmatprep.subr.mxu0 %v165_v34  ;;  %v269_v33 = vld [vmem:[%s3885_s0 + $0x7f8] sm:$0xff]  ;;  %v297_v34 = vld [vmem:[%s3886_s1 + $0xc8] sm:$0xff] }
  0x75   :  { %827 = vmatprep.mubr.f32.mxu0 %v379_v35  ;;  %947 = vmatprep.mubr.f32.mxu1 %v381_v36  ;;  %v299_v35 = vld [vmem:[%s3886_s1 + $0xd8] sm:$0xff]  ;;  %v220_v36 = vld [vmem:[%s3885_s0 + $0x670] sm:$0xff] }
  0x76   :  { %1935 = vmatpush3.msra.mxu0 %v149_v37  ;;  %948 = vmatmul.mubr.f32.gmra.mxu1 %v380_v39  ;;  %v253_v37 = vld [vmem:[%s3885_s0 + $0x778] sm:$0xff] }
  0x77   :  { %828 = vmatmul.mubr.f32.gmra.mxu0 %v378_v38  ;;  %1997 = vmatprep.subr.mxu1 %v198_v40  ;;  %v235_v38 = vld [vmem:[%s3885_s0 + $0x6e8] sm:$0xff]  ;;  %v315_v39 = vld [vmem:[%s3886_s1 + $0x158] sm:$0xff] }
  0x78   :  { %1936 = vmatprep.subr.mxu0 %v164_v41  ;;  %1998 = vmatpush3.msra.mxu1 %v182_v42  ;;  %v317_v40 = vld [vmem:[%s3886_s1 + $0x168] sm:$0xff]  ;;  %v268_v42 = vld [vmem:[%s3885_s0 + $0x7f0] sm:$0xff] }
  0x79   :  { %1937 = vmatpush3.msra.mxu0 %v148_v43  ;;  %1999 = vmatprep.subr.mxu1 %v197_v44  ;;  %v219_v41 = vld [vmem:[%s3885_s0 + $0x668] sm:$0xff]  ;;  %v314_v43 = vld [vmem:[%s3886_s1 + $0x150] sm:$0xff]  ;;  %v316_v44 = vld [vmem:[%s3886_s1 + $0x160] sm:$0xff] }
  0x7a   :  { %832 = vmatprep.mubr.f32.mxu0 %v396_v45  ;;  %952 = vmatprep.mubr.f32.mxu1 %v398_v46  ;;  %v234_v45 = vld [vmem:[%s3885_s0 + $0x6e0] sm:$0xff]  ;;  %v252_v46 = vld [vmem:[%s3885_s0 + $0x770] sm:$0xff] }
  0x7b   :  { %2000 = vmatpush3.msra.mxu1 %v181_v47  ;;  %833 = vmatmul.mubr.f32.gmra.mxu0 %v395_v48  ;;  %v218_v47 = vld [vmem:[%s3885_s0 + $0x660] sm:$0xff]  ;;  %v267_v48 = vld [vmem:[%s3885_s0 + $0x7e8] sm:$0xff] }
  0x7c   :  { %953 = vmatmul.mubr.f32.gmra.mxu1 %v397_v49  ;;  %1938 = vmatprep.subr.mxu0 %v163_v50  ;;  %v332_v49 = vld [vmem:[%s3886_s1 + $0x1e0] sm:$0xff]  ;;  %v334_v50 = vld [vmem:[%s3886_s1 + $0x1f0] sm:$0xff] }
  0x7d   :  { %2001 = vmatprep.subr.mxu1 %v196_v51  ;;  %1939 = vmatpush3.msra.mxu0 %v147_v52  ;;  %v233_v51 = vld [vmem:[%s3885_s0 + $0x6d8] sm:$0xff]  ;;  %v251_v52 = vld [vmem:[%s3885_s0 + $0x768] sm:$0xff] }
  0x7e   :  { %2002 = vmatpush3.msra.mxu1 %v180_v53  ;;  %837 = vmatprep.mubr.f32.mxu0 %v413_v54  ;;  %v331_v53 = vld [vmem:[%s3886_s1 + $0x1d8] sm:$0xff]  ;;  %v333_v54 = vld [vmem:[%s3886_s1 + $0x1e8] sm:$0xff] }
  0x7f   :  { %957 = vmatprep.mubr.f32.mxu1 %v415_v55  ;;  %1940 = vmatprep.subr.mxu0 %v162_v56  ;;  %v217_v55 = vld [vmem:[%s3885_s0 + $0x658] sm:$0xff]  ;;  %v266_v56 = vld [vmem:[%s3885_s0 + $0x7e0] sm:$0xff] }
  0x80   :  { %838 = vmatmul.mubr.f32.gmra.mxu0 %v412_v57  ;;  %958 = vmatmul.mubr.f32.gmra.mxu1 %v414_v58  ;;  %v232_v57 = vld [vmem:[%s3885_s0 + $0x6d0] sm:$0xff]  ;;  %v250_v58 = vld [vmem:[%s3885_s0 + $0x760] sm:$0xff] }
  0x81   :  { %1941 = vmatpush3.msra.mxu0 %v146_v59  ;;  %2003 = vmatprep.subr.mxu1 %v195_v60  ;;  %v349_v59 = vld [vmem:[%s3886_s1 + $0x268] sm:$0xff]  ;;  %v351_v60 = vld [vmem:[%s3886_s1 + $0x278] sm:$0xff] }
  0x82   :  { %1942 = vmatprep.subr.mxu0 %v161_v61  ;;  %2004 = vmatpush3.msra.mxu1 %v179_v62  ;;  %v216_v61 = vld [vmem:[%s3885_s0 + $0x650] sm:$0xff]  ;;  %v265_v62 = vld [vmem:[%s3885_s0 + $0x7d8] sm:$0xff] }
  0x83   :  { %1943 = vmatpush3.msra.mxu0 %v145_v63  ;;  %2005 = vmatprep.subr.mxu1 %v194_v0  ;;  %v348_v63 = vld [vmem:[%s3886_s1 + $0x260] sm:$0xff]  ;;  %v350_v0 = vld [vmem:[%s3886_s1 + $0x270] sm:$0xff] }
  0x84   :  { %842 = vmatprep.mubr.f32.mxu0 %v430_v1  ;;  %962 = vmatprep.mubr.f32.mxu1 %v432_v2  ;;  %v231_v1 = vld [vmem:[%s3885_s0 + $0x6c8] sm:$0xff]  ;;  %v249_v2 = vld [vmem:[%s3885_s0 + $0x758] sm:$0xff] }
  0x85   :  { %2006 = vmatpush3.msra.mxu1 %v178_v3  ;;  %843 = vmatmul.mubr.f32.gmra.mxu0 %v429_v4  ;;  %v215_v3 = vld [vmem:[%s3885_s0 + $0x648] sm:$0xff]  ;;  %v264_v4 = vld [vmem:[%s3885_s0 + $0x7d0] sm:$0xff] }
  0x86   :  { %963 = vmatmul.mubr.f32.gmra.mxu1 %v431_v5  ;;  %1944 = vmatprep.subr.mxu0 %v160_v6  ;;  %v366_v5 = vld [vmem:[%s3886_s1 + $0x2f0] sm:$0xff]  ;;  %v368_v6 = vld [vmem:[%s3886_s1 + $0x300] sm:$0xff] }
  0x87   :  { %2007 = vmatprep.subr.mxu1 %v193_v7  ;;  %1945 = vmatpush3.msra.mxu0 %v144_v8  ;;  %v248_v7 = vld [vmem:[%s3885_s0 + $0x750] sm:$0xff]  ;;  %v365_v8 = vld [vmem:[%s3886_s1 + $0x2e8] sm:$0xff] }
  0x88   :  { %2008 = vmatpush3.msra.mxu1 %v177_v9  ;;  %847 = vmatprep.mubr.f32.mxu0 %v447_v11  ;;  %v367_v9 = vld [vmem:[%s3886_s1 + $0x2f8] sm:$0xff]  ;;  %v263_v11 = vld [vmem:[%s3885_s0 + $0x7c8] sm:$0xff] }
  0x89   :  { %2009 = vmatprep.subr.mxu1 %v192_v10  ;;  %967 = vmatprep.mubr.f32.mxu1 %v449_v12  ;;  %v230_v10 = vld [vmem:[%s3885_s0 + $0x6c0] sm:$0xff] }
  0x8a   :  { %1946 = vmatprep.subr.mxu0 %v159_v13  ;;  %2010 = vmatpush3.msra.mxu1 %v176_v14  ;;  %v214_v12 = vld [vmem:[%s3885_s0 + $0x640] sm:$0xff]  ;;  %v247_v13 = vld [vmem:[%s3885_s0 + $0x748] sm:$0xff]  ;;  %v229_v14 = vld [vmem:[%s3885_s0 + $0x6b8] sm:$0xff] }
  0x8b   :  { %848 = vmatmul.mubr.f32.gmra.mxu0 %v446_v15  ;;  %968 = vmatmul.mubr.f32.gmra.mxu1 %v448_v16  ;;  %v383_v15 = vld [vmem:[%s3886_s1 + $0x378] sm:$0xff]  ;;  %v385_v16 = vld [vmem:[%s3886_s1 + $0x388] sm:$0xff] }
  0x8c   :  { %1947 = vmatpush3.msra.mxu0 %v143_v17  ;;  %2011 = vmatprep.subr.mxu1 %v191_v18  ;;  %v213_v17 = vld [vmem:[%s3885_s0 + $0x638] sm:$0xff]  ;;  %v382_v18 = vld [vmem:[%s3886_s1 + $0x370] sm:$0xff] }
  0x8d   :  { %1948 = vmatprep.subr.mxu0 %v158_v19  ;;  %2012 = vmatpush3.msra.mxu1 %v175_v20  ;;  %v384_v19 = vld [vmem:[%s3886_s1 + $0x380] sm:$0xff] }
  0x8e   :  { %1949 = vmatpush3.msra.mxu0 %v142_v21  ;;  %2013 = vmatprep.subr.mxu1 %v190_v22  ;;  %v262_v20 = vld [vmem:[%s3885_s0 + $0x7c0] sm:$0xff]  ;;  %v228_v21 = vld [vmem:[%s3885_s0 + $0x6b0] sm:$0xff] }
  0x8f   :  { %1037 = vmatprep.mubr.f32.mxu0 %v281_v23  ;;  %2014 = vmatpush3.msra.mxu1 %v174_v24  ;;  %v246_v22 = vld [vmem:[%s3885_s0 + $0x740] sm:$0xff]  ;;  %v212_v23 = vld [vmem:[%s3885_s0 + $0x630] sm:$0xff]  ;;  %v261_v24 = vld [vmem:[%s3885_s0 + $0x7b8] sm:$0xff] }
  0x90   :  { %1157 = vmatprep.mubr.f32.mxu1 %v283_v25  ;;  %1038 = vmatmul.mubr.f32.vlgmr.msra.gmra.mxu0 %v280_v26  ;;  %v400_v25 = vld [vmem:[%s3886_s1 + $0x400] sm:$0xff]  ;;  %v402_v26 = vld [vmem:[%s3886_s1 + $0x410] sm:$0xff] }
  0x91   :  { %1158 = vmatmul.mubr.f32.vlgmr.msra.gmra.mxu1 %v282_v27  ;;  %2048 = vmatprep.subr.mxu0 %v237_v28  ;;  %v245_v27 = vld [vmem:[%s3885_s0 + $0x738] sm:$0xff] }
  0x92   :  { %1042 = vmatprep.mubr.f32.mxu0 %v298_v29  ;;  %2049 = vmatpush3.msra.mxu0 %v221_v30  ;;  %v399_v28 = vld [vmem:[%s3886_s1 + $0x3f8] sm:$0xff]  ;;  %v401_v29 = vld [vmem:[%s3886_s1 + $0x408] sm:$0xff] }
  0x93   :  { %1162 = vmatprep.mubr.f32.mxu1 %v300_v31  ;;  %2050 = vmatprep.subr.mxu0 %v236_v32  ;;  %v227_v30 = vld [vmem:[%s3885_s0 + $0x6a8] sm:$0xff]  ;;  %v260_v31 = vld [vmem:[%s3885_s0 + $0x7b0] sm:$0xff] }
  0x94   :  { %2113 = vmatprep.subr.mxu1 %v269_v33  ;;  %1043 = vmatmul.mubr.f32.gmra.mxu0 %v297_v34  ;;  %v211_v32 = vld [vmem:[%s3885_s0 + $0x628] sm:$0xff]  ;;  %v244_v33 = vld [vmem:[%s3885_s0 + $0x730] sm:$0xff] }
  0x95   :  { %1163 = vmatmul.mubr.f32.gmra.mxu1 %v299_v35  ;;  %2051 = vmatpush3.msra.mxu0 %v220_v36  ;;  %v417_v34 = vld [vmem:[%s3886_s1 + $0x488] sm:$0xff]  ;;  %v419_v35 = vld [vmem:[%s3886_s1 + $0x498] sm:$0xff]  ;;  %v226_v36 = vld [vmem:[%s3885_s0 + $0x6a0] sm:$0xff] }
  0x96   :  { %2114 = vmatpush3.msra.mxu1 %v253_v37  ;;  %2052 = vmatprep.subr.mxu0 %v235_v38  ;;  %v416_v37 = vld [vmem:[%s3886_s1 + $0x480] sm:$0xff]  ;;  %v418_v38 = vld [vmem:[%s3886_s1 + $0x490] sm:$0xff] }
  0x97   :  { %1047 = vmatprep.mubr.f32.mxu0 %v315_v39  ;;  %1167 = vmatprep.mubr.f32.mxu1 %v317_v40  ;;  %v210_v39 = vld [vmem:[%s3885_s0 + $0x620] sm:$0xff]  ;;  %v259_v40 = vld [vmem:[%s3885_s0 + $0x7a8] sm:$0xff] }
  0x98   :  { %2053 = vmatpush3.msra.mxu0 %v219_v41  ;;  %2115 = vmatprep.subr.mxu1 %v268_v42  ;;  %v225_v41 = vld [vmem:[%s3885_s0 + $0x698] sm:$0xff]  ;;  %v243_v42 = vld [vmem:[%s3885_s0 + $0x728] sm:$0xff] }
  0x99   :  { %1048 = vmatmul.mubr.f32.gmra.mxu0 %v314_v43  ;;  %1168 = vmatmul.mubr.f32.gmra.mxu1 %v316_v44  ;;  %v209_v43 = vld [vmem:[%s3885_s0 + $0x618] sm:$0xff]  ;;  %v258_v44 = vld [vmem:[%s3885_s0 + $0x7a0] sm:$0xff] }
  0x9a   :  { %2054 = vmatprep.subr.mxu0 %v234_v45  ;;  %2116 = vmatpush3.msra.mxu1 %v252_v46  ;;  %v434_v45 = vld [vmem:[%s3886_s1 + $0x510] sm:$0xff]  ;;  %v436_v46 = vld [vmem:[%s3886_s1 + $0x520] sm:$0xff] }
  0x9b   :  { %2055 = vmatpush3.msra.mxu0 %v218_v47  ;;  %2117 = vmatprep.subr.mxu1 %v267_v48  ;;  %v242_v47 = vld [vmem:[%s3885_s0 + $0x720] sm:$0xff]  ;;  %v433_v48 = vld [vmem:[%s3886_s1 + $0x508] sm:$0xff] }
  0x9c   :  { %1052 = vmatprep.mubr.f32.mxu0 %v332_v49  ;;  %1172 = vmatprep.mubr.f32.mxu1 %v334_v50  ;;  %v435_v49 = vld [vmem:[%s3886_s1 + $0x518] sm:$0xff]  ;;  %v224_v50 = vld [vmem:[%s3885_s0 + $0x690] sm:$0xff] }
  0x9d   :  { %2056 = vmatprep.subr.mxu0 %v233_v51  ;;  %2118 = vmatpush3.msra.mxu1 %v251_v52  ;;  %v257_v51 = vld [vmem:[%s3885_s0 + $0x798] sm:$0xff]  ;;  %v208_v52 = vld [vmem:[%s3885_s0 + $0x610] sm:$0xff] }
  0x9e   :  { %1053 = vmatmul.mubr.f32.gmra.mxu0 %v331_v53  ;;  %1173 = vmatmul.mubr.f32.gmra.mxu1 %v333_v54  ;;  %v241_v53 = vld [vmem:[%s3885_s0 + $0x718] sm:$0xff]  ;;  %v256_v54 = vld [vmem:[%s3885_s0 + $0x790] sm:$0xff] }
  0x9f   :  { %2057 = vmatpush3.msra.mxu0 %v217_v55  ;;  %2119 = vmatprep.subr.mxu1 %v266_v56  ;;  %v451_v55 = vld [vmem:[%s3886_s1 + $0x598] sm:$0x3f]  ;;  %v453_v56 = vld [vmem:[%s3886_s1 + $0x5a8] sm:$0x3f] }
  0xa0   :  { %2058 = vmatprep.subr.mxu0 %v232_v57  ;;  %2120 = vmatpush3.msra.mxu1 %v250_v58  ;;  %v223_v57 = vld [vmem:[%s3885_s0 + $0x688] sm:$0xff]  ;;  %v240_v58 = vld [vmem:[%s3885_s0 + $0x710] sm:$0xff] }
  0xa1   :  { %1057 = vmatprep.mubr.f32.mxu0 %v349_v59  ;;  %1177 = vmatprep.mubr.f32.mxu1 %v351_v60  ;;  %v450_v59 = vld [vmem:[%s3886_s1 + $0x590] sm:$0x3f]  ;;  %v452_v60 = vld [vmem:[%s3886_s1 + $0x5a0] sm:$0x3f] }
  0xa2   :  { %2059 = vmatpush3.msra.mxu0 %v216_v61  ;;  %2121 = vmatprep.subr.mxu1 %v265_v62  ;;  %v207_v61 = vld [vmem:[%s3885_s0 + $0x608] sm:$0xff] }
  0xa3   :  { %1058 = vmatmul.mubr.f32.gmra.mxu0 %v348_v63  ;;  %1178 = vmatmul.mubr.f32.gmra.mxu1 %v350_v0  ;;  %v255_v62 = vld [vmem:[%s3885_s0 + $0x788] sm:$0xff]  ;;  %v222_v63 = vld [vmem:[%s3885_s0 + $0x680] sm:$0xff] }
  0xa4   :  { %2060 = vmatprep.subr.mxu0 %v231_v1  ;;  %2122 = vmatpush3.msra.mxu1 %v249_v2  ;;  %v239_v0 = vld [vmem:[%s3885_s0 + $0x708] sm:$0xff]  ;;  %v206_v1 = vld [vmem:[%s3885_s0 + $0x600] sm:$0xff] }
  0xa5   :  { %2061 = vmatpush3.msra.mxu0 %v215_v3  ;;  %2123 = vmatprep.subr.mxu1 %v264_v4  ;;  %v254_v2 = vld [vmem:[%s3885_s0 + $0x780] sm:$0xff]  ;;  %v285_v3 = vld [vmem:[%s3886_s1 + $0x68] sm:$0xff] }
  0xa6   :  { %1062 = vmatprep.mubr.f32.mxu0 %v366_v5  ;;  %1182 = vmatprep.mubr.f32.mxu1 %v368_v6  ;;  %v238_v4 = vld [vmem:[%s3885_s0 + $0x700] sm:$0xff]  ;;  %v287_v5 = vld [vmem:[%s3886_s1 + $0x78] sm:$0xff] }
  0xa7   :  { %2124 = vmatpush3.msra.mxu1 %v248_v7  ;;  %1063 = vmatmul.mubr.f32.gmra.mxu0 %v365_v8  ;;  %v284_v6 = vld [vmem:[%s3886_s1 + $0x60] sm:$0xff]  ;;  %v286_v7 = vld [vmem:[%s3886_s1 + $0x70] sm:$0xff] }
  0xa8   :  { %1183 = vmatmul.mubr.f32.gmra.mxu1 %v367_v9  ;;  %2062 = vmatprep.subr.mxu0 %v230_v10  ;;  %v302_v8 = vld [vmem:[%s3886_s1 + $0xf0] sm:$0xff]  ;;  %v271_v9 = vld [vmem:[%s3885_s0 + $0x808] sm:$0xff]  ;;  %v304_v10 = vld [vmem:[%s3886_s1 + $0x100] sm:$0xff] }
  0xa9   :  { %2125 = vmatprep.subr.mxu1 %v263_v11  ;;  %2063 = vmatpush3.msra.mxu0 %v214_v12  ;;  %v2234_v11 = vmov 0.0   ;;  %v301_v12 = vld [vmem:[%s3886_s1 + $0xe8] sm:$0xff] }
  0xaa   :  { %2126 = vmatpush3.msra.mxu1 %v247_v13  ;;  %2064 = vmatprep.subr.mxu0 %v229_v14  ;;  %v303_v13 = vld [vmem:[%s3886_s1 + $0xf8] sm:$0xff] }
  0xab   :  { %1067 = vmatprep.mubr.f32.mxu0 %v383_v15  ;;  %1187 = vmatprep.mubr.f32.mxu1 %v385_v16  ;;  %v319_v14 = vld [vmem:[%s3886_s1 + $0x178] sm:$0xff]  ;;  %v321_v15 = vld [vmem:[%s3886_s1 + $0x188] sm:$0xff]  ;;  %v270_v16 = vld [vmem:[%s3885_s0 + $0x800] sm:$0xff] }
  0xac   :  { %2065 = vmatpush3.msra.mxu0 %v213_v17  ;;  %1188 = vmatmul.mubr.f32.gmra.mxu1 %v384_v19  ;;  %v318_v17 = vld [vmem:[%s3886_s1 + $0x170] sm:$0xff]  ;;  %v336_v19 = vld [vmem:[%s3886_s1 + $0x200] sm:$0xff] }
  0xad   :  { %1068 = vmatmul.mubr.f32.gmra.mxu0 %v382_v18  ;;  %2127 = vmatprep.subr.mxu1 %v262_v20  ;;  %v320_v18 = vld [vmem:[%s3886_s1 + $0x180] sm:$0xff]  ;;  %v338_v20 = vld [vmem:[%s3886_s1 + $0x210] sm:$0xff] }
  0xae   :  { %2066 = vmatprep.subr.mxu0 %v228_v21  ;;  %2128 = vmatpush3.msra.mxu1 %v246_v22  ;;  %v335_v21 = vld [vmem:[%s3886_s1 + $0x1f8] sm:$0xff]  ;;  %v337_v22 = vld [vmem:[%s3886_s1 + $0x208] sm:$0xff] }
  0xaf   :  { %2067 = vmatpush3.msra.mxu0 %v212_v23  ;;  %2129 = vmatprep.subr.mxu1 %v261_v24  ;;  %v353_v23 = vld [vmem:[%s3886_s1 + $0x288] sm:$0xff]  ;;  %v355_v24 = vld [vmem:[%s3886_s1 + $0x298] sm:$0xff] }
  0xb0   :  { %1072 = vmatprep.mubr.f32.mxu0 %v400_v25  ;;  %1192 = vmatprep.mubr.f32.mxu1 %v402_v26  ;;  %v352_v25 = vld [vmem:[%s3886_s1 + $0x280] sm:$0xff]  ;;  %v354_v26 = vld [vmem:[%s3886_s1 + $0x290] sm:$0xff] }
  0xb1   :  { %2130 = vmatpush3.msra.mxu1 %v245_v27  ;;  %1073 = vmatmul.mubr.f32.gmra.mxu0 %v399_v28  ;;  %v370_v27 = vld [vmem:[%s3886_s1 + $0x310] sm:$0xff]  ;;  %v372_v28 = vld [vmem:[%s3886_s1 + $0x320] sm:$0xff] }
  0xb2   :  { %1193 = vmatmul.mubr.f32.gmra.mxu1 %v401_v29  ;;  %2068 = vmatprep.subr.mxu0 %v227_v30  ;;  %v369_v29 = vld [vmem:[%s3886_s1 + $0x308] sm:$0xff]  ;;  %v371_v30 = vld [vmem:[%s3886_s1 + $0x318] sm:$0xff] }
  0xb3   :  { %2131 = vmatprep.subr.mxu1 %v260_v31  ;;  %2069 = vmatpush3.msra.mxu0 %v211_v32  ;;  %v387_v31 = vld [vmem:[%s3886_s1 + $0x398] sm:$0xff]  ;;  %v389_v32 = vld [vmem:[%s3886_s1 + $0x3a8] sm:$0xff] }
  0xb4   :  { %2132 = vmatpush3.msra.mxu1 %v244_v33  ;;  %1077 = vmatprep.mubr.f32.mxu0 %v417_v34  ;;  %v386_v33 = vld [vmem:[%s3886_s1 + $0x390] sm:$0xff]  ;;  %v388_v34 = vld [vmem:[%s3886_s1 + $0x3a0] sm:$0xff] }
  0xb5   :  { %1197 = vmatprep.mubr.f32.mxu1 %v419_v35  ;;  %2070 = vmatprep.subr.mxu0 %v226_v36  ;;  %v404_v35 = vld [vmem:[%s3886_s1 + $0x420] sm:$0xff]  ;;  %v406_v36 = vld [vmem:[%s3886_s1 + $0x430] sm:$0xff] }
  0xb6   :  { %1078 = vmatmul.mubr.f32.gmra.mxu0 %v416_v37  ;;  %1198 = vmatmul.mubr.f32.gmra.mxu1 %v418_v38  ;;  %v403_v37 = vld [vmem:[%s3886_s1 + $0x418] sm:$0xff]  ;;  %v405_v38 = vld [vmem:[%s3886_s1 + $0x428] sm:$0xff] }
  0xb7   :  { %2071 = vmatpush3.msra.mxu0 %v210_v39  ;;  %2133 = vmatprep.subr.mxu1 %v259_v40  ;;  %v421_v39 = vld [vmem:[%s3886_s1 + $0x4a8] sm:$0xff]  ;;  %v423_v40 = vld [vmem:[%s3886_s1 + $0x4b8] sm:$0xff] }
  0xb8   :  { %2072 = vmatprep.subr.mxu0 %v225_v41  ;;  %2134 = vmatpush3.msra.mxu1 %v243_v42  ;;  %v420_v41 = vld [vmem:[%s3886_s1 + $0x4a0] sm:$0xff]  ;;  %v422_v42 = vld [vmem:[%s3886_s1 + $0x4b0] sm:$0xff] }
  0xb9   :  { %2073 = vmatpush3.msra.mxu0 %v209_v43  ;;  %2135 = vmatprep.subr.mxu1 %v258_v44  ;;  %v438_v43 = vld [vmem:[%s3886_s1 + $0x530] sm:$0xff]  ;;  %v440_v44 = vld [vmem:[%s3886_s1 + $0x540] sm:$0xff] }
  0xba   :  { %1082 = vmatprep.mubr.f32.mxu0 %v434_v45  ;;  %1202 = vmatprep.mubr.f32.mxu1 %v436_v46 }
  0xbb   :  { %2136 = vmatpush3.msra.mxu1 %v242_v47  ;;  %1083 = vmatmul.mubr.f32.gmra.mxu0 %v433_v48 }
  0xbc   :  { %1203 = vmatmul.mubr.f32.gmra.mxu1 %v435_v49  ;;  %2074 = vmatprep.subr.mxu0 %v224_v50  ;;  %v437_v49 = vld [vmem:[%s3886_s1 + $0x528] sm:$0xff]  ;;  %v439_v50 = vld [vmem:[%s3886_s1 + $0x538] sm:$0xff] }
  0xbd   :  { %2137 = vmatprep.subr.mxu1 %v257_v51  ;;  %2075 = vmatpush3.msra.mxu0 %v208_v52 }
  0xbe   :  { %2138 = vmatpush3.msra.mxu1 %v241_v53  ;;  %1087 = vmatprep.mubr.f32.mxu0 %v451_v55  ;;  %v455_v53 = vld [vmem:[%s3886_s1 + $0x5b8] sm:$0x3f] }
  0xbf   :  { %2139 = vmatprep.subr.mxu1 %v256_v54  ;;  %1207 = vmatprep.mubr.f32.mxu1 %v453_v56  ;;  %v457_v54 = vld [vmem:[%s3886_s1 + $0x5c8] sm:$0x3f] }
  0xc0   :  { %2076 = vmatprep.subr.mxu0 %v223_v57  ;;  %2140 = vmatpush3.msra.mxu1 %v240_v58 }
  0xc1   :  { %1088 = vmatmul.mubr.f32.gmra.mxu0 %v450_v59  ;;  %1208 = vmatmul.mubr.f32.gmra.mxu1 %v452_v60  ;;  %v454_v60 = vld [vmem:[%s3886_s1 + $0x5b0] sm:$0x3f] }
  0xc2   :  { %2077 = vmatpush3.msra.mxu0 %v207_v61  ;;  %2141 = vmatprep.subr.mxu1 %v255_v62  ;;  %v456_v61 = vld [vmem:[%s3886_s1 + $0x5c0] sm:$0x3f] }
  0xc3   :  { %2078 = vmatprep.subr.mxu0 %v222_v63  ;;  %2142 = vmatpush3.msra.mxu1 %v239_v0 }
  0xc4   :  { %2079 = vmatpush3.msra.mxu0 %v206_v1  ;;  %2143 = vmatprep.subr.mxu1 %v254_v2 }
  0xc5   :  { %1277 = vmatprep.mubr.f32.mxu0 %v285_v3  ;;  %2144 = vmatpush3.msra.mxu1 %v238_v4  ;;  %v288_v4 = vld [vmem:[%s3886_s1 + $0x80] sm:$0xff] }
  0xc6   :  { %1397 = vmatprep.mubr.f32.mxu1 %v287_v5  ;;  %1278 = vmatmul.mubr.f32.vlgmr.msra.gmra.mxu0 %v284_v6  ;;  %v390_v5 = vld [vmem:[%s3886_s1 + $0x3b0] sm:$0xff] }
  0xc7   :  { %1398 = vmatmul.mubr.f32.vlgmr.msra.gmra.mxu1 %v286_v7  ;;  %2191 = vmatprep.subr.mxu0 %v2234_v11 }
  0xc8   :  { %1282 = vmatprep.mubr.f32.mxu0 %v302_v8  ;;  %2192 = vmatpush3.msra.mxu0 %v271_v9 }
  0xc9   :  { %1402 = vmatprep.mubr.f32.mxu1 %v304_v10  ;;  %2228 = vmatprep.subr.mxu1 %v2234_v11 }
  0xca   :  { %2193 = vmatprep.subr.mxu0 %v2234_v11  ;;  %1283 = vmatmul.mubr.f32.gmra.mxu0 %v301_v12 }
  0xcb   :  { %1403 = vmatmul.mubr.f32.gmra.mxu1 %v303_v13  ;;  %1287 = vmatprep.mubr.f32.mxu0 %v319_v14  ;;  %v305_v13 = vld [vmem:[%s3886_s1 + $0x108] sm:$0xff]  ;;  %v407_v14 = vld [vmem:[%s3886_s1 + $0x438] sm:$0xff] }
  0xcc   :  { %2230 = vmatpush3.msra.mxu1 %v271_v9  ;;  %1407 = vmatprep.mubr.f32.mxu1 %v321_v15 }
  0xcd   :  { %2194 = vmatpush3.msra.mxu0 %v270_v16  ;;  %2229 = vmatprep.subr.mxu1 %v2234_v11 }
  0xce   :  { %1288 = vmatmul.mubr.f32.gmra.mxu0 %v318_v17  ;;  %2231 = vmatpush3.msra.mxu1 %v270_v16 }
  0xcf   :  { %1408 = vmatmul.mubr.f32.gmra.mxu1 %v320_v18  ;;  %1292 = vmatprep.mubr.f32.mxu0 %v336_v19 }
  0xd0   :  { %1412 = vmatprep.mubr.f32.mxu1 %v338_v20  ;;  %v322_v20 = vld [vmem:[%s3886_s1 + $0x190] sm:$0xff] }
  0xd2   :  { %1293 = vmatmul.mubr.f32.gmra.mxu0 %v335_v21  ;;  %v424_v21 = vld [vmem:[%s3886_s1 + $0x4c0] sm:$0xff] }
  0xd3   :  { %1413 = vmatmul.mubr.f32.gmra.mxu1 %v337_v22  ;;  %1297 = vmatprep.mubr.f32.mxu0 %v353_v23 }
  0xd4   :  { %1417 = vmatprep.mubr.f32.mxu1 %v355_v24 }
  0xd6   :  { %1298 = vmatmul.mubr.f32.gmra.mxu0 %v352_v25 }
  0xd7   :  { %1418 = vmatmul.mubr.f32.gmra.mxu1 %v354_v26  ;;  %1302 = vmatprep.mubr.f32.mxu0 %v370_v27 }
  0xd8   :  { %1422 = vmatprep.mubr.f32.mxu1 %v372_v28  ;;  %v339_v28 = vld [vmem:[%s3886_s1 + $0x218] sm:$0xff] }
  0xda   :  { %1303 = vmatmul.mubr.f32.gmra.mxu0 %v369_v29  ;;  %v441_v29 = vld [vmem:[%s3886_s1 + $0x548] sm:$0xff] }
  0xdb   :  { %1423 = vmatmul.mubr.f32.gmra.mxu1 %v371_v30  ;;  %1307 = vmatprep.mubr.f32.mxu0 %v387_v31 }
  0xdc   :  { %1427 = vmatprep.mubr.f32.mxu1 %v389_v32 }
  0xde   :  { %1308 = vmatmul.mubr.f32.gmra.mxu0 %v386_v33 }
  0xdf   :  { %1428 = vmatmul.mubr.f32.gmra.mxu1 %v388_v34  ;;  %1312 = vmatprep.mubr.f32.mxu0 %v404_v35 }
  0xe0   :  { %1432 = vmatprep.mubr.f32.mxu1 %v406_v36 }
  0xe2   :  { %1313 = vmatmul.mubr.f32.gmra.mxu0 %v403_v37  ;;  %v356_v37 = vld [vmem:[%s3886_s1 + $0x2a0] sm:$0xff] }
  0xe3   :  { %1433 = vmatmul.mubr.f32.gmra.mxu1 %v405_v38  ;;  %1317 = vmatprep.mubr.f32.mxu0 %v421_v39  ;;  %v458_v38 = vld [vmem:[%s3886_s1 + $0x5d0] sm:$0x3f] }
  0xe4   :  { %1437 = vmatprep.mubr.f32.mxu1 %v423_v40  ;;  %v1690_v45 = vpop.f32.mrf.mxu0 }
  0xe5   :  { %v1755_v46 = vpop.f32.mrf.mxu1 }
  0xe6   :  { %1318 = vmatmul.mubr.f32.gmra.mxu0 %v420_v41  ;;  %v1691_v47 = vpop.f32.mrf.mxu0 }
  0xe7   :  { %1438 = vmatmul.mubr.f32.gmra.mxu1 %v422_v42  ;;  %v1756_v48 = vpop.f32.mrf.mxu1  ;;  %1322 = vmatprep.mubr.f32.mxu0 %v438_v43  ;;  %v1692_v51 = vadd.f32 %v1691_v47, %v1690_v45 }
  0xe8   :  { %1442 = vmatprep.mubr.f32.mxu1 %v440_v44  ;;  %v1757_v52 = vadd.f32 %v1756_v48, %v1755_v46  ;;  %v1693_v55 = vpop.f32.mrf.mxu0  ;;  %v373_v44 = vld [vmem:[%s3886_s1 + $0x328] sm:$0xff] }
  0xe9   :  { %v1758_v56 = vpop.f32.mrf.mxu1 }
  0xea   :  { %v3556_v57 = vadd.f32 %v1757_v52, %v1692_v51  ;;  %1323 = vmatmul.mubr.f32.gmra.mxu0 %v437_v49  ;;  %v1694_v58 = vpop.f32.mrf.mxu0 }
  0xeb   :  { %1443 = vmatmul.mubr.f32.gmra.mxu1 %v439_v50  ;;  %v1759_v59 = vpop.f32.mrf.mxu1  ;;  %1327 = vmatprep.mubr.f32.mxu0 %v455_v53  ;;  %v1695_v62 = vadd.f32 %v1694_v58, %v1693_v55 }
  0xec   :  { %1447 = vmatprep.mubr.f32.mxu1 %v457_v54  ;;  %v1760_v63 = vadd.f32 %v1759_v59, %v1758_v56 }
  0xed   :  { %v1696_v0 = vpop.f32.mrf.mxu0  ;;  %v1761_v2 = vpop.f32.mrf.mxu1 }
  0xee   :  { %v3564_v1 = vadd.f32 %v1760_v63, %v1695_v62  ;;  %1328 = vmatmul.mubr.f32.gmra.mxu0 %v454_v60 }
  0xef   :  { %1448 = vmatmul.mubr.f32.gmra.mxu1 %v456_v61  ;;  %v1697_v3 = vpop.f32.mrf.mxu0  ;;  %2195 = vmatprep.mubr.msk.f32.mxu0 %vm2235_vm0, %v2234_v11  ;;  %v1762_v7 = vpop.f32.mrf.mxu1 }
  0xf0   :  { %2213 = vmatprep.mubr.msk.f32.mxu1 %vm2235_vm0, %v2234_v11  ;;  %v1698_v6 = vadd.f32 %v1697_v3, %v1696_v0  ;;  %v1763_v8 = vadd.f32 %v1762_v7, %v1761_v2 }
  0xf2   :  { %v1699_v9 = vpop.f32.mrf.mxu0  ;;  %2196 = vmatmul.mubr.msk.f32.vlgmr.msra.gmra.mxu0 %vm459_vm1, %v288_v4  ;;  %v3578_v10 = vadd.f32 %v1763_v8, %v1698_v6  ;;  %v1764_v12 = vpop.f32.mrf.mxu1 }
  0xf3   :  { %2214 = vmatmul.mubr.msk.f32.vlgmr.msra.gmra.mxu1 %vm459_vm1, %v390_v5  ;;  %2198 = vmatprep.mubr.msk.f32.mxu0 %vm2235_vm0, %v2234_v11 }
  0xf4   :  { %2216 = vmatprep.mubr.msk.f32.mxu1 %vm2235_vm0, %v2234_v11  ;;  %v1700_v15 = vpop.f32.mrf.mxu0  ;;  %v1765_v17 = vpop.f32.mrf.mxu1 }
  0xf5   :  { %v1701_v16 = vadd.f32 %v1700_v15, %v1699_v9  ;;  %v1766_v18 = vadd.f32 %v1765_v17, %v1764_v12 }
  0xf6   :  { %2199 = vmatmul.mubr.msk.f32.gmra.mxu0 %vm459_vm1, %v305_v13 }
  0xf7   :  { %2217 = vmatmul.mubr.msk.f32.gmra.mxu1 %vm459_vm1, %v407_v14  ;;  %v1702_v19 = vpop.f32.mrf.mxu0  ;;  %2201 = vmatprep.mubr.msk.f32.mxu0 %vm2235_vm0, %v2234_v11  ;;  %v3602_v22 = vadd.f32 %v1766_v18, %v1701_v16  ;;  %v1767_v23 = vpop.f32.mrf.mxu1 }
  0xf8   :  { %2219 = vmatprep.mubr.msk.f32.mxu1 %vm2235_vm0, %v2234_v11 }
  0xf9   :  { %v1703_v24 = vpop.f32.mrf.mxu0  ;;  %v1768_v26 = vpop.f32.mrf.mxu1 }
  0xfa   :  { %v1704_v25 = vadd.f32 %v1703_v24, %v1702_v19  ;;  %2202 = vmatmul.mubr.msk.f32.gmra.mxu0 %vm459_vm1, %v322_v20  ;;  %v1769_v27 = vadd.f32 %v1768_v26, %v1767_v23 }
  0xfb   :  { %2220 = vmatmul.mubr.msk.f32.gmra.mxu1 %vm459_vm1, %v424_v21  ;;  %2204 = vmatprep.mubr.msk.f32.mxu0 %vm2235_vm0, %v2234_v11  ;;  %v1705_v30 = vpop.f32.mrf.mxu0 }
  0xfc   :  { %2222 = vmatprep.mubr.msk.f32.mxu1 %vm2235_vm0, %v2234_v11  ;;  %v1770_v31 = vpop.f32.mrf.mxu1  ;;  %v3616_v32 = vadd.f32 %v1769_v27, %v1704_v25 }
  0xfd   :  { %v1706_v33 = vpop.f32.mrf.mxu0 }
  0xfe   :  { %v1771_v34 = vpop.f32.mrf.mxu1  ;;  %2205 = vmatmul.mubr.msk.f32.gmra.mxu0 %vm459_vm1, %v339_v28  ;;  %v1707_v35 = vadd.f32 %v1706_v33, %v1705_v30 }
  0xff   :  { %2223 = vmatmul.mubr.msk.f32.gmra.mxu1 %vm459_vm1, %v441_v29  ;;  %v1772_v36 = vadd.f32 %v1771_v34, %v1770_v31  ;;  %2207 = vmatprep.mubr.msk.f32.mxu0 %vm2235_vm0, %v2234_v11 }
 0x100   :  { %2225 = vmatprep.mubr.msk.f32.mxu1 %vm2235_vm0, %v2234_v11  ;;  %v1773_v41 = vpop.f32.mrf.mxu1 }
 0x101   :  { %v3630_v39 = vadd.f32 %v1772_v36, %v1707_v35  ;;  %v1708_v40 = vpop.f32.mrf.mxu0 }
 0x102   :  { %2208 = vmatmul.mubr.msk.f32.gmra.mxu0 %vm459_vm1, %v356_v37  ;;  %v1774_v43 = vpop.f32.mrf.mxu1 }
 0x103   :  { %2226 = vmatmul.mubr.msk.f32.gmra.mxu1 %vm459_vm1, %v458_v38  ;;  %v1709_v42 = vpop.f32.mrf.mxu0  ;;  %2210 = vmatprep.mubr.msk.f32.mxu0 %vm2235_vm0, %v2234_v11  ;;  %v1775_v46 = vadd.f32 %v1774_v43, %v1773_v41 }
 0x104   :  { %v1710_v45 = vadd.f32 %v1709_v42, %v1708_v40 }
 0x105   :  { %v1711_v48 = vpop.f32.mrf.mxu0 }
 0x106   :  { %v3639_v47 = vadd.f32 %v1775_v46, %v1710_v45  ;;  %v1776_v49 = vpop.f32.mrf.mxu1  ;;  %2211 = vmatmul.mubr.msk.f32.gmra.mxu0 %vm459_vm1, %v373_v44 }
 0x107   :  { %v1712_v50 = vpop.f32.mrf.mxu0 }
 0x108   :  { %v1777_v51 = vpop.f32.mrf.mxu1  ;;  %v1713_v52 = vadd.f32 %v1712_v50, %v1711_v48 }
 0x109   :  { %v1778_v53 = vadd.f32 %v1777_v51, %v1776_v49 }
 0x10a   :  { %v1714_v54 = vpop.f32.mrf.mxu0  ;;  %v1779_v11 = vpop.f32.mrf.mxu1 }
 0x10b   :  { %v3642_v55 = vadd.f32 %v1778_v53, %v1713_v52 }
 0x10c   :  { %v1715_v56 = vpop.f32.mrf.mxu0  ;;  %v1780_v59 = vpop.f32.mrf.mxu1 }
 0x10d   :  { %v1716_v58 = vadd.f32 %v1715_v56, %v1714_v54  ;;  %v1781_v60 = vadd.f32 %v1780_v59, %v1779_v11 }
 0x10f   :  { %v3644_v61 = vadd.f32 %v1781_v60, %v1716_v58  ;;  %v1717_v62 = vpop.f32.mrf.mxu0 }
 0x110   :  { %v1782_v63 = vpop.f32.mrf.mxu1 }
 0x111   :  { %v1718_v0 = vpop.f32.mrf.mxu0 }
 0x112   :  { %v1783_v2 = vpop.f32.mrf.mxu1  ;;  %v1719_v3 = vadd.f32 %v1718_v0, %v1717_v62 }
 0x113   :  { %v1784_v4 = vadd.f32 %v1783_v2, %v1782_v63 }
 0x115   :  { %v3646_v5 = vadd.f32 %v1784_v4, %v1719_v3  ;;  %v1720_v6 = vpop.f32.mrf.mxu0  ;;  %v1785_v7 = vpop.f32.mrf.mxu1 }
 0x117   :  { %v1721_v8 = vpop.f32.mrf.mxu0  ;;  %v1786_v12 = vpop.f32.mrf.mxu1 }
 0x118   :  { %v1722_v9 = vadd.f32 %v1721_v8, %v1720_v6  ;;  %v1787_v13 = vadd.f32 %v1786_v12, %v1785_v7 }
 0x11a   :  { %v3648_v14 = vadd.f32 %v1787_v13, %v1722_v9  ;;  %v1820_v15 = vpop.f32.mrf.mxu0 }
 0x11b   :  { %v1885_v16 = vpop.f32.mrf.mxu1 }
 0x11c   :  { %v1821_v17 = vpop.f32.mrf.mxu0 }
 0x11d   :  { %v1886_v18 = vpop.f32.mrf.mxu1  ;;  %v1822_v19 = vadd.f32 %v1821_v17, %v1820_v15 }
 0x11e   :  { %v1887_v20 = vadd.f32 %v1886_v18, %v1885_v16  ;;  %v1823_v21 = vpop.f32.mrf.mxu0 }
 0x11f   :  { %v1888_v23 = vpop.f32.mrf.mxu1  ;;  %v800_v24 = vadd.f32 %v1822_v19, %v3556_v57 }
 0x120   :  { %v1824_v25 = vpop.f32.mrf.mxu0 }
 0x121   :  { %v1889_v26 = vpop.f32.mrf.mxu1  ;;  %v3651_v27 = vadd.f32 %v1887_v20, %v800_v24  ;;  %v1825_v28 = vadd.f32 %v1824_v25, %v1823_v21 }
 0x122   :  { %v1890_v29 = vadd.f32 %v1889_v26, %v1888_v23 }
 0x123   :  { %v1826_v30 = vpop.f32.mrf.mxu0  ;;  %v805_v31 = vadd.f32 %v1825_v28, %v3564_v1  ;;  %v1891_v33 = vpop.f32.mrf.mxu1 }
 0x125   :  { %v1827_v34 = vpop.f32.mrf.mxu0  ;;  %v3654_v35 = vadd.f32 %v1890_v29, %v805_v31  ;;  %v1892_v37 = vpop.f32.mrf.mxu1 }
 0x126   :  { %v1828_v36 = vadd.f32 %v1827_v34, %v1826_v30  ;;  %v1893_v38 = vadd.f32 %v1892_v37, %v1891_v33 }
 0x128   :  { %v810_v40 = vadd.f32 %v1828_v36, %v3578_v10  ;;  %v1829_v41 = vpop.f32.mrf.mxu0  ;;  %v1894_v57 = vpop.f32.mrf.mxu1 }
 0x12a   :  { %v3657_v42 = vadd.f32 %v1893_v38, %v810_v40  ;;  %v1830_v43 = vpop.f32.mrf.mxu0  ;;  %v1895_v45 = vpop.f32.mrf.mxu1 }
 0x12b   :  { %v1831_v44 = vadd.f32 %v1830_v43, %v1829_v41  ;;  %v1896_v46 = vadd.f32 %v1895_v45, %v1894_v57 }
 0x12d   :  { %v815_v48 = vadd.f32 %v1831_v44, %v3602_v22  ;;  %v1832_v1 = vpop.f32.mrf.mxu0  ;;  %v1897_v49 = vpop.f32.mrf.mxu1 }
 0x12f   :  { %v3660_v50 = vadd.f32 %v1896_v46, %v815_v48  ;;  %v1833_v51 = vpop.f32.mrf.mxu0  ;;  %v1898_v53 = vpop.f32.mrf.mxu1 }
 0x130   :  { %v1834_v52 = vadd.f32 %v1833_v51, %v1832_v1  ;;  %v1899_v54 = vadd.f32 %v1898_v53, %v1897_v49 }
 0x131   :  { %v1835_v11 = vpop.f32.mrf.mxu0 }
 0x132   :  { %v820_v10 = vadd.f32 %v1834_v52, %v3616_v32  ;;  %v1900_v56 = vpop.f32.mrf.mxu1 }
 0x133   :  { %v1836_v59 = vpop.f32.mrf.mxu0 }
 0x134   :  { %v3663_v58 = vadd.f32 %v1899_v54, %v820_v10  ;;  %v1901_v60 = vpop.f32.mrf.mxu1  ;;  %v1837_v62 = vadd.f32 %v1836_v59, %v1835_v11 }
 0x135   :  { %v1902_v63 = vadd.f32 %v1901_v60, %v1900_v56 }
 0x136   :  { %v825_v22 = vadd.f32 %v1837_v62, %v3630_v39  ;;  %v1903_v2 = vpop.f32.mrf.mxu1 }
 0x137   :  { %v1838_v0 = vpop.f32.mrf.mxu0 }
 0x138   :  { %v3666_v3 = vadd.f32 %v1902_v63, %v825_v22  ;;  %v1904_v6 = vpop.f32.mrf.mxu1 }
 0x139   :  { %v1839_v4 = vpop.f32.mrf.mxu0  ;;  %v1905_v8 = vadd.f32 %v1904_v6, %v1903_v2 }
 0x13a   :  { %v1840_v7 = vadd.f32 %v1839_v4, %v1838_v0 }
 0x13b   :  { %v1841_v9 = vpop.f32.mrf.mxu0 }
 0x13c   :  { %v830_v32 = vadd.f32 %v1840_v7, %v3639_v47  ;;  %v1906_v12 = vpop.f32.mrf.mxu1 }
 0x13d   :  { %v1842_v15 = vpop.f32.mrf.mxu0 }
 0x13e   :  { %v3669_v13 = vadd.f32 %v1905_v8, %v830_v32  ;;  %v1907_v16 = vpop.f32.mrf.mxu1  ;;  %v1843_v17 = vadd.f32 %v1842_v15, %v1841_v9 }
 0x13f   :  { %v1908_v18 = vadd.f32 %v1907_v16, %v1906_v12 }
 0x140   :  { %v1844_v19 = vpop.f32.mrf.mxu0  ;;  %v835_v39 = vadd.f32 %v1843_v17, %v3642_v55  ;;  %v1909_v20 = vpop.f32.mrf.mxu1 }
 0x142   :  { %v1845_v21 = vpop.f32.mrf.mxu0  ;;  %v3672_v23 = vadd.f32 %v1908_v18, %v835_v39  ;;  %v1910_v25 = vpop.f32.mrf.mxu1 }
 0x143   :  { %v1846_v24 = vadd.f32 %v1845_v21, %v1844_v19  ;;  %v1911_v26 = vadd.f32 %v1910_v25, %v1909_v20 }
 0x145   :  { %v840_v47 = vadd.f32 %v1846_v24, %v3644_v61  ;;  %v1847_v28 = vpop.f32.mrf.mxu0 }
 0x146   :  { %v1912_v29 = vpop.f32.mrf.mxu1 }
 0x147   :  { %v3675_v30 = vadd.f32 %v1911_v26, %v840_v47  ;;  %v1848_v31 = vpop.f32.mrf.mxu0 }
 0x148   :  { %v1913_v33 = vpop.f32.mrf.mxu1  ;;  %v1849_v34 = vadd.f32 %v1848_v31, %v1847_v28 }
 0x149   :  { %v1914_v36 = vadd.f32 %v1913_v33, %v1912_v29 }
 0x14a   :  { %v845_v37 = vadd.f32 %v1849_v34, %v3646_v5 }
 0x14b   :  { %v1850_v55 = vpop.f32.mrf.mxu0  ;;  %v1915_v38 = vpop.f32.mrf.mxu1 }
 0x14c   :  { %v3678_v40 = vadd.f32 %v1914_v36, %v845_v37 }
 0x14d   :  { %v1851_v41 = vpop.f32.mrf.mxu0  ;;  %v1916_v43 = vpop.f32.mrf.mxu1 }
 0x14e   :  { %v1852_v57 = vadd.f32 %v1851_v41, %v1850_v55  ;;  %v1917_v44 = vadd.f32 %v1916_v43, %v1915_v38 }
 0x150   :  { %v850_v61 = vadd.f32 %v1852_v57, %v3648_v14  ;;  %v1950_v45 = vpop.f32.mrf.mxu0 }
 0x151   :  { %v2015_v46 = vpop.f32.mrf.mxu1 }
 0x152   :  { %v3681_v48 = vadd.f32 %v1917_v44, %v850_v61  ;;  %v1951_v1 = vpop.f32.mrf.mxu0 }
 0x153   :  { %v2016_v49 = vpop.f32.mrf.mxu1  ;;  %v1952_v51 = vadd.f32 %v1951_v1, %v1950_v45 }
 0x154   :  { %v2017_v52 = vadd.f32 %v2016_v49, %v2015_v46  ;;  %v1953_v53 = vpop.f32.mrf.mxu0 }
 0x155   :  { %v2018_v5 = vpop.f32.mrf.mxu1  ;;  %v1040_v54 = vadd.f32 %v1952_v51, %v3651_v27 }
 0x156   :  { %v1954_v10 = vpop.f32.mrf.mxu0 }
 0x157   :  { %v2019_v11 = vpop.f32.mrf.mxu1  ;;  %v3684_v56 = vadd.f32 %v2017_v52, %v1040_v54  ;;  %v1955_v59 = vadd.f32 %v1954_v10, %v1953_v53 }
 0x158   :  { %v2020_v60 = vadd.f32 %v2019_v11, %v2018_v5 }
 0x159   :  { %v1956_v62 = vpop.f32.mrf.mxu0  ;;  %v1045_v14 = vadd.f32 %v1955_v59, %v3654_v35  ;;  %v2021_v63 = vpop.f32.mrf.mxu1 }
 0x15b   :  { %v1957_v22 = vpop.f32.mrf.mxu0  ;;  %v3687_v0 = vadd.f32 %v2020_v60, %v1045_v14  ;;  %v2022_v4 = vpop.f32.mrf.mxu1 }
 0x15c   :  { %v1958_v2 = vadd.f32 %v1957_v22, %v1956_v62  ;;  %v2023_v6 = vadd.f32 %v2022_v4, %v2021_v63 }
 0x15e   :  { %v1050_v7 = vadd.f32 %v1958_v2, %v3657_v42  ;;  %v1959_v8 = vpop.f32.mrf.mxu0  ;;  %v2024_v27 = vpop.f32.mrf.mxu1 }
 0x160   :  { %v3690_v32 = vadd.f32 %v2023_v6, %v1050_v7  ;;  %v1960_v9 = vpop.f32.mrf.mxu0  ;;  %v2025_v15 = vpop.f32.mrf.mxu1 }
 0x161   :  { %v1961_v12 = vadd.f32 %v1960_v9, %v1959_v8  ;;  %v2026_v16 = vadd.f32 %v2025_v15, %v2024_v27 }
 0x163   :  { %v1055_v17 = vadd.f32 %v1961_v12, %v3660_v50  ;;  %v1962_v35 = vpop.f32.mrf.mxu0  ;;  %v2027_v18 = vpop.f32.mrf.mxu1 }
 0x165   :  { %v3693_v19 = vadd.f32 %v2026_v16, %v1055_v17  ;;  %v1963_v39 = vpop.f32.mrf.mxu0  ;;  %v2028_v21 = vpop.f32.mrf.mxu1 }
 0x166   :  { %v1964_v20 = vadd.f32 %v1963_v39, %v1962_v35  ;;  %v2029_v24 = vadd.f32 %v2028_v21, %v2027_v18 }
 0x167   :  { %v1965_v25 = vpop.f32.mrf.mxu0 }
 0x168   :  { %v1060_v42 = vadd.f32 %v1964_v20, %v3663_v58  ;;  %v2030_v26 = vpop.f32.mrf.mxu1 }
 0x169   :  { %v1966_v28 = vpop.f32.mrf.mxu0 }
 0x16a   :  { %v3696_v47 = vadd.f32 %v2029_v24, %v1060_v42  ;;  %v2031_v29 = vpop.f32.mrf.mxu1  ;;  %v1967_v31 = vadd.f32 %v1966_v28, %v1965_v25 }
 0x16b   :  { %v2032_v33 = vadd.f32 %v2031_v29, %v2030_v26 }
 0x16c   :  { %3889 = vst [vmem:[#allocation2_spill] sm:$0xff] %v3696_v47  ;;  %v1065_v50 = vadd.f32 %v1967_v31, %v3666_v3  ;;  %v3699_v36 = vpop.f32.mrf.mxu1 }
 0x16d   :  { %v1968_v34 = vpop.f32.mrf.mxu0 }
 0x16e   :  { %v3701_v37 = vadd.f32 %v2032_v33, %v1065_v50  ;;  %v2034_v38 = vpop.f32.mrf.mxu1 }
 0x16f   :  { %v1969_v55 = vpop.f32.mrf.mxu0 }
 0x170   :  { %3890 = vst [vmem:[#allocation3_spill] sm:$0xff] %v3701_v37 }
 0x171   :  { %v1971_v41 = vpop.f32.mrf.mxu0 }
 0x172   :  { %v3703_v57 = vpop.f32.mrf.mxu1 }
 0x173   :  { %v1972_v58 = vpop.f32.mrf.mxu0 }
 0x174   :  { %v2037_v43 = vpop.f32.mrf.mxu1 }
 0x176   :  { %v1974_v44 = vpop.f32.mrf.mxu0  ;;  %v3705_v61 = vpop.f32.mrf.mxu1 }
 0x178   :  { %v1975_v45 = vpop.f32.mrf.mxu0  ;;  %v3707_v46 = vpop.f32.mrf.mxu1 }
 0x17b   :  { %v1977_v1 = vpop.f32.mrf.mxu0 }
 0x17c   :  { %v2042_v3 = vpop.f32.mrf.mxu1 }
 0x17d   :  { %v1978_v49 = vpop.f32.mrf.mxu0 }
 0x17e   :  { %v2043_v51 = vpop.f32.mrf.mxu1  ;;  %v1979_v52 = vadd.f32 %v1978_v49, %v1977_v1  ;;  %v1970_v49 = vadd.f32 %v1969_v55, %v1968_v34  ;;  %v1976_v34 = vadd.f32 %v1975_v45, %v1974_v44 }
 0x17f   :  { %v2044_v53 = vadd.f32 %v2043_v51, %v2042_v3 }
 0x180   :  { %v1085_v5 = vadd.f32 %v1979_v52, %v3678_v40  ;;  %v1070_v37 = vadd.f32 %v1970_v49, %v3669_v13 }
 0x181   :  { %v3710_v54 = vpop.f32.mrf.mxu0  ;;  %v3712_v10 = vpop.f32.mrf.mxu1 }
 0x182   :  { %v3714_v11 = vadd.f32 %v2044_v53, %v1085_v5  ;;  %v1973_v53 = vadd.f32 %v1972_v58, %v1971_v41 }
 0x183   :  { %v3716_v59 = vpop.f32.mrf.mxu0  ;;  %v3718_v60 = vpop.f32.mrf.mxu1 }
 0x184   :  { %3891 = vst [vmem:[#allocation4_spill] sm:$0xff] %v3714_v11 }
 0x186   :  { %v2080_v62 = vpop.f32.mrf.mxu0 }
 0x187   :  { %v2145_v14 = vpop.f32.mrf.mxu1 }
 0x188   :  { %v2081_v63 = vpop.f32.mrf.mxu0 }
 0x189   :  { %v2146_v22 = vpop.f32.mrf.mxu1 }
 0x18a   :  { %v2083_v2 = vpop.f32.mrf.mxu0  ;;  %v2147_v49 = vadd.f32 %v2146_v22, %v2145_v14 }
 0x18b   :  { %v2148_v4 = vpop.f32.mrf.mxu1 }
 0x18c   :  { %v2084_v6 = vpop.f32.mrf.mxu0 }
 0x18d   :  { %v2149_v7 = vpop.f32.mrf.mxu1 }
 0x18e   :  { %v2086_v8 = vpop.f32.mrf.mxu0  ;;  %v2150_v22 = vadd.f32 %v2149_v7, %v2148_v4 }
 0x18f   :  { %v3720_v40 = vpop.f32.mrf.mxu1 }
 0x190   :  { %v2087_v27 = vpop.f32.mrf.mxu0 }
 0x191   :  { %v3722_v9 = vpop.f32.mrf.mxu1 }
 0x192   :  { %v3724_v12 = vpop.f32.mrf.mxu0 }
 0x193   :  { %v3726_v15 = vpop.f32.mrf.mxu1 }
 0x194   :  { %v3728_v16 = vpop.f32.mrf.mxu0 }
 0x195   :  { %v3730_v17 = vpop.f32.mrf.mxu1 }
 0x196   :  { %v3732_v35 = vpop.f32.mrf.mxu0 }
 0x197   :  { %v3734_v18 = vpop.f32.mrf.mxu1 }
 0x198   :  { %3892 = vst [vmem:[#allocation5_spill] sm:$0xff] %v3734_v18  ;;  %v3736_v39 = vpop.f32.mrf.mxu0  ;;  %v2038_v18 = vadd.f32 %v2037_v43, %v3703_v57  ;;  %v1080_v57 = vadd.f32 %v1976_v34, %v3675_v30  ;;  %v2041_v43 = vadd.f32 %v3707_v46, %v3705_v61  ;;  %v1982_v61 = vadd.f32 %v3716_v59, %v3710_v54 }
 0x199   :  { %v3738_v20 = vpop.f32.mrf.mxu1  ;;  %v2153_v46 = vadd.f32 %v3722_v9, %v3720_v40 }
 0x19a   :  { %3893 = vst [vmem:[#allocation6_spill] sm:$0xff] %v3738_v20  ;;  %v3740_v21 = vpop.f32.mrf.mxu0  ;;  %v1075_v20 = vadd.f32 %v1973_v53, %v3672_v23  ;;  %v1200_v30 = vadd.f32 %v2041_v43, %v1080_v57 }
 0x19b   :  { %3894 = vst [vmem:[#allocation7_spill] sm:$0xff] %v3740_v21  ;;  %v3742_v24 = vpop.f32.mrf.mxu1 }
 0x19c   :  { %3895 = vst [vmem:[#allocation8_spill] sm:$0xff] %v3742_v24  ;;  %v3744_v42 = vpop.f32.mrf.mxu0  ;;  %v2035_v24 = vadd.f32 %v2034_v38, %v3699_v36 }
 0x19d   :  { %3896 = vst [vmem:[#allocation9_spill] sm:$0xff] %v3744_v42  ;;  %v3746_v25 = vpop.f32.mrf.mxu1  ;;  %v2082_v42 = vadd.f32 %v2081_v63, %v2080_v62  ;;  %v1195_v63 = vadd.f32 %v2038_v18, %v1075_v20 }
 0x19e   :  { %3897 = vst [vmem:[#allocation10_spill] sm:$0xff] %v3746_v25  ;;  %v2098_v26 = vpop.f32.mrf.mxu0  ;;  %v1190_v58 = vadd.f32 %v2035_v24, %v1070_v37  ;;  %v2088_v37 = vadd.f32 %v2087_v27, %v2086_v8  ;;  %v2091_v8 = vadd.f32 %v3728_v16, %v3724_v12  ;;  %v1090_v12 = vadd.f32 %v1982_v61, %v3681_v48 }
 0x19f   :  { %v2163_v28 = vpop.f32.mrf.mxu1  ;;  %v1280_v13 = vadd.f32 %v2082_v42, %v3684_v56 }
 0x1a0   :  { %v2099_v29 = vpop.f32.mrf.mxu0  ;;  %v1290_v7 = vadd.f32 %v2088_v37, %v3690_v32  ;;  %v1295_v16 = vadd.f32 %v2091_v8, %v3693_v19  ;;  %v2156_v32 = vadd.f32 %v3730_v17, %v3726_v15  ;;  %v3900_v15 = vld [vmem:[#allocation2_spill] sm:$0xff] }
 0x1a1   :  { %v2164_v31 = vpop.f32.mrf.mxu1  ;;  %v2100_v47 = vadd.f32 %v2099_v29, %v2098_v26  ;;  %v1400_v14 = vadd.f32 %v2147_v49, %v1280_v13 }
 0x1a2   :  { %v2101_v33 = vpop.f32.mrf.mxu0  ;;  %v2165_v23 = vadd.f32 %v2164_v31, %v2163_v28  ;;  %v2094_v31 = vadd.f32 %v3736_v39, %v3732_v35  ;;  %v3902_v35 = vld [vmem:[#allocation6_spill] sm:$0xff]  ;;  %v1415_v13 = vadd.f32 %v2156_v32, %v1295_v16  ;;  %v3903_v49 = vld [vmem:[#allocation7_spill] sm:$0xff] }
 0x1a3   :  { %v2166_v50 = vpop.f32.mrf.mxu1 }
 0x1a4   :  { %v2102_v1 = vpop.f32.mrf.mxu0  ;;  %v1300_v17 = vadd.f32 %v2094_v31, %v3900_v15 }
 0x1a5   :  { %v2167_v3 = vpop.f32.mrf.mxu1  ;;  %v2103_v36 = vadd.f32 %v2102_v1, %v2101_v33 }
 0x1a6   :  { %v2104_v51 = vpop.f32.mrf.mxu0  ;;  %v2168_v56 = vadd.f32 %v2167_v3, %v2166_v50 }
 0x1a7   :  { %v2169_v52 = vpop.f32.mrf.mxu1  ;;  %v1315_v24 = vadd.f32 %v2103_v36, %v1195_v63  ;;  %v3904_v36 = vld [vmem:[#allocation9_spill] sm:$0xff] }
 0x1a8   :  { %v2105_v5 = vpop.f32.mrf.mxu0  ;;  %v2097_v63 = vadd.f32 %v3904_v36, %v3903_v49  ;;  %v1612_v36 = vld [vmem:[%s3887_s2 + $0x20] sm:$0xff] }
 0x1a9   :  { %v2170_v11 = vpop.f32.mrf.mxu1  ;;  %v1435_v28 = vadd.f32 %v2168_v56, %v1315_v24 }
 0x1aa   :  { %v3750_v25 = vpop.f32.mrf.mxu0  ;;  %v2171_v59 = vadd.f32 %v2170_v11, %v2169_v52 }
 0x1ab   :  { %3898 = vst [vmem:[#allocation11_spill] sm:$0xff] %v3750_v25  ;;  %v3752_v21 = vpop.f32.mrf.mxu1  ;;  %v1310_v25 = vadd.f32 %v2100_v47, %v1190_v58  ;;  %v2106_v47 = vadd.f32 %v2105_v5, %v2104_v51  ;;  %v3901_v5 = vld [vmem:[#allocation5_spill] sm:$0xff] }
 0x1ac   :  { %3899 = vst [vmem:[#allocation12_spill] sm:$0xff] %v3752_v21  ;;  %v3756_v55 = vpop.f32.mrf.mxu0  ;;  %v2085_v21 = vadd.f32 %v2084_v6, %v2083_v2  ;;  %v2159_v39 = vadd.f32 %v3902_v35, %v3901_v5  ;;  %v1611_v35 = vld [vmem:[%s3887_s2 + $0x18] sm:$0xff] }
 0x1ad   :  { %v3758_v41 = vpop.f32.mrf.mxu1  ;;  %v1430_v18 = vadd.f32 %v2165_v23, %v1310_v25  ;;  %v1320_v54 = vadd.f32 %v2106_v47, %v1200_v30 }
 0x1ae   :  { %v2110_v38 = vpop.f32.mrf.mxu0  ;;  %v1285_v2 = vadd.f32 %v2085_v21, %v3687_v0  ;;  %v2047_v21 = vadd.f32 %v3718_v60, %v3712_v10  ;;  %v1410_v60 = vadd.f32 %v2153_v46, %v1290_v7  ;;  %v1420_v61 = vadd.f32 %v2159_v39, %v1300_v17  ;;  %v1616_v39 = vld [vmem:[%s3887_s2 + $0x40] sm:$0xff] }
 0x1af   :  { %v3761_v62 = vpop.f32.mrf.mxu1  ;;  %v1440_v52 = vadd.f32 %v2171_v59, %v1320_v54 }
 0x1b0   :  { %v2111_v44 = vpop.f32.mrf.mxu0  ;;  %v1405_v40 = vadd.f32 %v2150_v22, %v1285_v2  ;;  %v1210_v53 = vadd.f32 %v2047_v21, %v1090_v12 }
 0x1b1   :  { %v3766_v45 = vpop.f32.mrf.mxu1  ;;  %v2112_v48 = vadd.f32 %v2111_v44, %v2110_v38 }
 0x1b2   :  { %v1519_v42 = vpop.f32.mrf.mxu0  ;;  %v3905_v37 = vld [vmem:[#allocation11_spill] sm:$0xff] }
 0x1b3   :  { %v1549_v26 = vpop.f32.mrf.mxu1  ;;  %v1520_v6 = vadd.f32 %v1519_v42, %v1400_v14  ;;  %v2109_v24 = vadd.f32 %v3756_v55, %v3905_v37  ;;  %v1330_v56 = vadd.f32 %v2112_v48, %v1210_v53  ;;  %v2177_v14 = vadd.f32 %v3766_v45, %v3761_v62  ;;  %v3906_v42 = vld [vmem:[#allocation8_spill] sm:$0xff] }
 0x1b4   :  { %v2197_v27 = vpop.f32.mrf.mxu0  ;;  %v1550_v20 = vadd.f32 %v1549_v26, %v1430_v18  ;;  %v3907_v26 = vld [vmem:[#allocation10_spill] sm:$0xff]  ;;  %v3908_v18 = vld [vmem:[#allocation3_spill] sm:$0xff]  ;;  %v3909_v55 = vld [vmem:[#allocation4_spill] sm:$0xff] }
 0x1b5   :  { %v2215_v4 = vpop.f32.mrf.mxu1  ;;  %v1574_v0 = vsel %vm1573_vm2, %v1520_v6, 0.0  ;;  %v2162_v2 = vadd.f32 %v3907_v26, %v3906_v42  ;;  %v1305_v30 = vadd.f32 %v2097_v63, %v3908_v18  ;;  %v1325_v7 = vadd.f32 %v2109_v24, %v3909_v55  ;;  %v3910_v62 = vld [vmem:[#allocation12_spill] sm:$0xff] }
 0x1b6   :  { %v1524_v25 = vpop.f32.mrf.mxu0  ;;  %1575 = vadd.xlane.f32.xlu0 %v1574_v0  ;;  %v1592_v11 = vsel %vm1573_vm2, %v1550_v20, 0.0  ;;  %v2174_v45 = vadd.f32 %v3758_v41, %v3910_v62 }
 0x1b7   :  { %v1554_v29 = vpop.f32.mrf.mxu1  ;;  %v1525_v10 = vadd.f32 %v1524_v25, %v1405_v40 }
 0x1b8   :  { %v1555_v9 = vadd.f32 %v1554_v29, %v1435_v28  ;;  %v2200_v33 = vpop.f32.mrf.mxu0  ;;  %v1450_v28 = vadd.f32 %v2177_v14, %v1330_v56  ;;  %v1425_v29 = vadd.f32 %v2162_v2, %v1305_v30  ;;  %v1445_v40 = vadd.f32 %v2174_v45, %v1325_v7  ;;  %v1617_v56 = vld [vmem:[%s3887_s2 + $0x48] sm:$0xff] }
 0x1b9   :  { %v2218_v50 = vpop.f32.mrf.mxu1  ;;  %v1577_v43 = vsel %vm1573_vm2, %v1525_v10, 0.0  ;;  %v1608_v33 = vld [vmem:[%s3887_s2] sm:$0xff] }
 0x1ba   :  { %v1595_v1 = vsel %vm1573_vm2, %v1555_v9, 0.0  ;;  %v1529_v3 = vpop.f32.mrf.mxu0  ;;  %1593 = vadd.xlane.f32.xlu0 %v1592_v11 }
 0x1bb   :  { %v1559_v51 = vpop.f32.mrf.mxu1  ;;  %1596 = vadd.xlane.f32.xlu1 %v1595_v1  ;;  %v1530_v19 = vadd.f32 %v1529_v3, %v1410_v60  ;;  %v1615_v60 = vld [vmem:[%s3887_s2 + $0x38] sm:$0xff]  ;;  %v1614_v1 = vld [vmem:[%s3887_s2 + $0x30] sm:$0xff] }
 0x1bc   :  { %v2203_v34 = vpop.f32.mrf.mxu0  ;;  %v1560_v23 = vadd.f32 %v1559_v51, %v1440_v52  ;;  %v1609_v52 = vld [vmem:[%s3887_s2 + $0x8] sm:$0xff] }
 0x1bd   :  { %v2221_v58 = vpop.f32.mrf.mxu1  ;;  %v1580_v57 = vsel %vm1573_vm2, %v1530_v19, 0.0  ;;  %v1610_v19 = vld [vmem:[%s3887_s2 + $0x10] sm:$0xff] }
 0x1be   :  { %v1534_v38 = vpop.f32.mrf.mxu0  ;;  %1578 = vadd.xlane.f32.xlu0 %v1577_v43  ;;  %v1598_v8 = vsel %vm1573_vm2, %v1560_v23, 0.0  ;;  %v1618_v43 = vld [vmem:[%s3887_s2 + $0x50] sm:$0x3f] }
 0x1bf   :  { %v1564_v44 = vpop.f32.mrf.mxu1  ;;  %1581 = vadd.xlane.f32.xlu1 %v1580_v57  ;;  %v1535_v22 = vadd.f32 %v1534_v38, %v1415_v13  ;;  %v1613_v57 = vld [vmem:[%s3887_s2 + $0x28] sm:$0xff] }
 0x1c0   :  { %v2206_v47 = vpop.f32.mrf.mxu0  ;;  %v1565_v16 = vadd.f32 %v1564_v44, %v1445_v40 }
 0x1c1   :  { %v2224_v6 = vpop.f32.mrf.mxu1  ;;  %v1583_v46 = vsel %vm1573_vm2, %v1535_v22, 0.0 }
 0x1c2   :  { %v1539_v27 = vpop.f32.mrf.mxu0  ;;  %1599 = vadd.xlane.f32.xlu0 %v1598_v8  ;;  %v1601_v41 = vsel %vm1573_vm2, %v1565_v16, 0.0 }
 0x1c3   :  { %v1569_v4 = vpop.f32.mrf.mxu1  ;;  %1584 = vadd.xlane.f32.xlu1 %v1583_v46  ;;  %v1540_v20 = vadd.f32 %v1539_v27, %v1420_v61 }
 0x1c4   :  { %v2209_v0 = vpop.f32.mrf.mxu0  ;;  %v1570_v25 = vadd.f32 %v1569_v4, %v1450_v28 }
 0x1c5   :  { %v2227_v21 = vpop.f32.mrf.mxu1  ;;  %v1586_v54 = vsel %vm1573_vm2, %v1540_v20, 0.0 }
 0x1c6   :  { %v1544_v59 = vpop.f32.mrf.mxu0  ;;  %1587 = vadd.xlane.f32.xlu0 %v1586_v54  ;;  %v1605_v31 = vsel %vm1604_vm3, %v1570_v25, 0.0 }
 0x1c7   :  { %v1545_v9 = vadd.f32 %v1544_v59, %v1425_v29 }
 0x1c8   :  { %v2212_v12 = vpop.f32.mrf.mxu0 }
 0x1c9   :  { %v1589_v32 = vsel %vm1573_vm2, %v1545_v9, 0.0 }
 0x1ca   :  { %1590 = vadd.xlane.f32.xlu1 %v1589_v32  ;;  %1606 = vadd.xlane.f32.xlu0 %v1605_v31 }
 0x1ce   :  { %1602 = vadd.xlane.f32.xlu1 %v1601_v41 }
 0x23f   :  { %v1576_v50 = vpop.xlane.xlu0 %1575 }
 0x240   :  { %v1619_v10 = vadd.f32 %v1608_v33, %v1576_v50 }
 0x242   :  { %1631 = vst.msk [vmem:[%s3888_s3] sm:$0xff] %vm1630_vm4, %v1619_v10 }
 0x243   :  { %v1594_v3 = vpop.xlane.xlu0 %1593 }
 0x244   :  { %v1597_v11 = vpop.xlane.xlu1 %1596  ;;  %v1625_v48 = vadd.f32 %v1614_v1, %v1594_v3 }
 0x245   :  { %v1626_v51 = vadd.f32 %v1615_v60, %v1597_v11 }
 0x246   :  { %1637 = vst.msk [vmem:[%s3888_s3 + $0x30] sm:$0xff] %vm1630_vm4, %v1625_v48 }
 0x247   :  { %1638 = vst.msk [vmem:[%s3888_s3 + $0x38] sm:$0xff] %vm1630_vm4, %v1626_v51  ;;  %v1579_v15 = vpop.xlane.xlu0 %1578 }
 0x248   :  { %v1582_v53 = vpop.xlane.xlu1 %1581  ;;  %v1620_v5 = vadd.f32 %v1609_v52, %v1579_v15 }
 0x249   :  { %v1621_v17 = vadd.f32 %v1610_v19, %v1582_v53 }
 0x24a   :  { %1632 = vst.msk [vmem:[%s3888_s3 + $0x8] sm:$0xff] %vm1630_vm4, %v1620_v5 }
 0x24b   :  { %1633 = vst.msk [vmem:[%s3888_s3 + $0x10] sm:$0xff] %vm1630_vm4, %v1621_v17  ;;  %v1600_v58 = vpop.xlane.xlu0 %1599 }
 0x24c   :  { %v1585_v34 = vpop.xlane.xlu1 %1584  ;;  %v1627_v49 = vadd.f32 %v1616_v39, %v1600_v58 }
 0x24d   :  { %v1622_v13 = vadd.f32 %v1611_v35, %v1585_v34 }
 0x24e   :  { %1639 = vst.msk [vmem:[%s3888_s3 + $0x40] sm:$0xff] %vm1630_vm4, %v1627_v49 }
 0x24f   :  { %1634 = vst.msk [vmem:[%s3888_s3 + $0x18] sm:$0xff] %vm1630_vm4, %v1622_v13  ;;  %v1588_v63 = vpop.xlane.xlu0 %1587 }
 0x250   :  { %v1623_v23 = vadd.f32 %v1612_v36, %v1588_v63 }
 0x252   :  { %1635 = vst.msk [vmem:[%s3888_s3 + $0x20] sm:$0xff] %vm1630_vm4, %v1623_v23 }
 0x253   :  { %v1591_v38 = vpop.xlane.xlu1 %1590  ;;  %v1607_v44 = vpop.xlane.xlu0 %1606 }
 0x254   :  { %v1624_v37 = vadd.f32 %v1613_v57, %v1591_v38  ;;  %v1629_v24 = vadd.f32 %v1618_v43, %v1607_v44 }
 0x256   :  { %1636 = vst.msk [vmem:[%s3888_s3 + $0x28] sm:$0xff] %vm1630_vm4, %v1624_v37 }
 0x257   :  { %1642 = vst.msk [vmem:[%s3888_s3 + $0x50] sm:$0x3f] %vm1641_vm5, %v1629_v24  ;;  %v1603_v14 = vpop.xlane.xlu1 %1602 }
 0x258   :  { %v1628_v22 = vadd.f32 %v1617_v56, %v1603_v14 }
 0x25a   :  { %1640 = vst.msk [vmem:[%s3888_s3 + $0x48] sm:$0xff] %vm1630_vm4, %v1628_v22 }

</bundles_post_ra>
